<compile_context>
chip_gen: v6e
topology: v6e:2x2x1
jax: 0.10.0
libtpu: 0.0.40
codegen_flags: <defaults>
</compile_context>

<pallas_src>
import functools

import jax
import jax.numpy as jnp
import numpy as np
from jax import lax
from jax.experimental import pallas as pl
from jax.experimental.pallas import tpu as pltpu


def _round_up(x, m):
    return (x + m - 1) // m * m


def _leaky(z, slope=0.01):
    return jnp.where(z > 0, z, slope * z)


def _vmem_capacity_bytes():
    # Generation-aware VMEM capacity (128 MiB on v5e/v6e, 64 MiB per TC on v7x).
    try:
        return int(pltpu.get_tpu_info().vmem_capacity_bytes)
    except Exception:
        return 64 << 20          # conservative fallback = smallest generation


def _mosaic_params(semantics, est_bytes):
    ceiling = int(_vmem_capacity_bytes() * 0.70)   # headroom for Mosaic scratch
    return pltpu.CompilerParams(
        dimension_semantics=semantics,
        vmem_limit_bytes=int(min(max(int(1.5 * est_bytes), 8 << 20), ceiling)))


# --------------------------------------------------------------------------- #
# Kernel A: fused diffusion hop (GCN + scattering share one adj streaming pass)#
# --------------------------------------------------------------------------- #
def _hop_kernel(adj_ref, rhs_ref, rhs_self_ref, fsct_ref, dsc_ref, dinv_ref,
                rhs_next_ref, gcn_ref, fsct_out_ref, dprev_ref, acc_ref,
                *, fp, tile_k):
    k = pl.program_id(1)

    @pl.when(k == 0)
    def _():
        acc_ref[...] = jnp.zeros_like(acc_ref)

    # RHS is VMEM-resident (full array); slice the k-th row band in-body.
    row = pl.multiple_of(k * tile_k, tile_k)
    acc_ref[...] += jnp.dot(adj_ref[...], rhs_ref[pl.ds(row, tile_k), :],
                            preferred_element_type=jnp.float32)

    @pl.when(k == pl.num_programs(1) - 1)
    def _():
        prod = acc_ref[...]                       # [tile_m, 2*Fp] f32
        dsc = dsc_ref[...]                        # (deg+1)^-1/2   [tile_m, 1]
        # GCN hop, self-loop folded:  f' = dsc * (W @ (dsc*f) + dsc*f)
        f_gcn = dsc * (prod[:, :fp] + rhs_self_ref[...].astype(jnp.float32))
        # scattering hop (lazy random walk):  f' = 0.5 f + 0.5 W D^-1 f
        f_prev = fsct_ref[...]
        f_sct = 0.5 * f_prev + 0.5 * prod[:, fp:]

        gcn_ref[...] = f_gcn.astype(gcn_ref.dtype)
        fsct_out_ref[...] = f_sct
        dprev_ref[...] = (f_prev - f_sct).astype(dprev_ref.dtype)
        # already-scaled, concatenated, cast RHS for the next adjacency pass
        rhs_next_ref[:, :fp] = (dsc * f_gcn).astype(rhs_next_ref.dtype)
        rhs_next_ref[:, fp:] = (dinv_ref[...] * f_sct).astype(rhs_next_ref.dtype)


def _fused_hop(adj, rhs, fsct, dsc, dinv, *, fp, tile_m, tile_k, feat_dtype):
    """adj: [Np,Np]; rhs: [Np,2Fp] = [dsc*f_gcn | dinv*f_sct]; fsct: [Np,Fp] f32.

    Returns (rhs_next, gcn_feature, fsct_new, fsct_prev - fsct_new)."""
    np_, c = rhs.shape
    isz = adj.dtype.itemsize
    fsz = np.dtype(feat_dtype).itemsize

    est = (2 * tile_m * tile_k * isz                       # adj tile (dbuf)
           + 2 * np_ * c * isz                             # resident RHS
           + 2 * tile_m * (fp * isz + fp * 4 + 8)          # rhs_self / fsct / deg
           + 2 * tile_m * (c * isz + 2 * fp * fsz + fp * 4)  # outputs (dbuf)
           + tile_m * c * 4)                               # f32 accumulator
    cost = pl.CostEstimate(
        flops=2 * np_ * np_ * c + 12 * np_ * c,
        transcendentals=0,
        bytes_accessed=(np_ * np_ * isz + np_ * c * isz
                        + np_ * (c * isz + 2 * fp * fsz + 2 * fp * 4)))

    row = lambda i, k: (i, 0)
    return pl.pallas_call(
        functools.partial(_hop_kernel, fp=fp, tile_k=tile_k),
        out_shape=(jax.ShapeDtypeStruct((np_, c), rhs.dtype),      # next RHS
                   jax.ShapeDtypeStruct((np_, fp), feat_dtype),    # GCN feature
                   jax.ShapeDtypeStruct((np_, fp), jnp.float32),   # new f_sct
                   jax.ShapeDtypeStruct((np_, fp), feat_dtype)),   # sct diff
        grid_spec=pltpu.PrefetchScalarGridSpec(
            num_scalar_prefetch=0,
            grid=(np_ // tile_m, np_ // tile_k),
            in_specs=[
                pl.BlockSpec((tile_m, tile_k), lambda i, k: (i, k)),  # adj
                pl.BlockSpec((np_, c), lambda i, k: (0, 0)),          # RHS (resident)
                pl.BlockSpec((tile_m, fp), row),                      # dsc*f_gcn rows
                pl.BlockSpec((tile_m, fp), row),                      # prev f_sct
                pl.BlockSpec((tile_m, 1), row),                       # dscale
                pl.BlockSpec((tile_m, 1), row),                       # dinv
            ],
            out_specs=[
                pl.BlockSpec((tile_m, c), row),
                pl.BlockSpec((tile_m, fp), row),
                pl.BlockSpec((tile_m, fp), row),
                pl.BlockSpec((tile_m, fp), row),
            ],
            scratch_shapes=[pltpu.VMEM((tile_m, c), jnp.float32)]),
        compiler_params=_mosaic_params(("parallel", "arbitrary"), est),
        cost_estimate=cost,
    )(adj, rhs, rhs, fsct, dsc, dinv)


# --------------------------------------------------------------------------- #
# Kernel B: fused leaky/abs + channel attention + 2-layer MLP (row tiled)      #
# --------------------------------------------------------------------------- #
def _attention_mlp_kernel(x_ref, g1_ref, g2_ref, g3_ref, d1_ref, d2_ref, d3_ref,
                          a1_ref, a2_ref, w1_ref, b1_ref, w2_ref, b2_ref,
                          out_ref):
    f32 = jnp.float32
    x = x_ref[...].astype(f32)
    feats = (_leaky(g1_ref[...].astype(f32)),
             _leaky(g2_ref[...].astype(f32)),
             _leaky(g3_ref[...].astype(f32)),
             jnp.abs(d1_ref[...].astype(f32)),
             jnp.abs(d2_ref[...].astype(f32)),
             jnp.abs(d3_ref[...].astype(f32)))

    # e_k = relu([h, h_k]) @ a  ==  relu(h) @ a[:F] + relu(h_k) @ a[F:]
    # VPU multiply + lane reductions instead of 7 width-1 MXU matvecs.
    a1 = a1_ref[...]                                            # [1, Fp]
    a2 = a2_ref[...]                                            # [1, Fp]
    e_h = jnp.sum(jnp.maximum(x, 0.0) * a1, axis=-1, keepdims=True)   # [tm, 1]
    es = [e_h + jnp.sum(jnp.maximum(f, 0.0) * a2, axis=-1, keepdims=True)
          for f in feats]

    # softmax over the 6 channels, kept as [tm, 1] columns (no concatenates).
    m = es[0]
    for e in es[1:]:
        m = jnp.maximum(m, e)
    ws = [jnp.exp(e - m) for e in es]
    tot = ws[0]
    for w in ws[1:]:
        tot = tot + w
    inv = (1.0 / 6.0) / tot             # exact; Kernel B is HBM-bound anyway

    h_prime = ws[0] * feats[0]
    for w, f in zip(ws[1:], feats[1:]):
        h_prime = h_prime + w * f
    h_prime = h_prime * inv

    # two linear layers (weights pre-transposed, possibly bf16) + leaky relu.
    y = jnp.dot(h_prime.astype(w1_ref.dtype), w1_ref[...],
                preferred_element_type=f32) + b1_ref[...]
    y = _leaky(y)
    y = jnp.dot(y.astype(w2_ref.dtype), w2_ref[...],
                preferred_element_type=f32) + b2_ref[...]
    out_ref[...] = _leaky(y)


def _attention_mlp(x, g1, g2, g3, d1, d2, d3, a1, a2, w1, b1, w2, b2, tile_b):
    np_, fp = x.shape
    row = lambda i: (i, 0)
    full = lambda i: (0, 0)
    feat_spec = pl.BlockSpec((tile_b, fp), row)
    est = (2 * 7 * tile_b * fp * x.dtype.itemsize          # feature tiles (dbuf)
           + 2 * (2 * fp * fp * w1.dtype.itemsize + 4 * fp * 4)
           + 2 * tile_b * fp * 4)                          # output
    cost = pl.CostEstimate(
        flops=4 * np_ * fp * fp + 50 * np_ * fp,
        transcendentals=6 * np_,
        bytes_accessed=(7 * np_ * fp * x.dtype.itemsize + np_ * fp * 4
                        + 2 * fp * fp * w1.dtype.itemsize + 16 * fp))
    return pl.pallas_call(
        _attention_mlp_kernel,
        out_shape=jax.ShapeDtypeStruct((np_, fp), jnp.float32),
        grid_spec=pltpu.PrefetchScalarGridSpec(
            num_scalar_prefetch=0,
            grid=(np_ // tile_b,),
            in_specs=[feat_spec] * 7 + [
                pl.BlockSpec((1, fp), full),      # a1
                pl.BlockSpec((1, fp), full),      # a2
                pl.BlockSpec((fp, fp), full),     # w1 (pre-transposed)
                pl.BlockSpec((1, fp), full),      # b1
                pl.BlockSpec((fp, fp), full),     # w2 (pre-transposed)
                pl.BlockSpec((1, fp), full),      # b2
            ],
            out_specs=pl.BlockSpec((tile_b, fp), row)),
        compiler_params=_mosaic_params(("parallel",), est),
        cost_estimate=cost,
    )(x, g1, g2, g3, d1, d2, d3, a1, a2, w1, b1, w2, b2)


# --------------------------------------------------------------------------- #
# Forward pass (wrapper): padding, degree vectors, hop chaining               #
# --------------------------------------------------------------------------- #
@functools.partial(jax.jit, static_argnames=("use_bf16",))
def sct_conv(adj, x, a_vec, w1, b1, w2, b2, use_bf16=False):
    """adj: [N,N] dense symmetric, x: [N,F], a_vec: [2F,1],
    w1/w2: [F,F] pre-transposed Linear weights (y = x @ w + b), b: [F]."""
    N, F = x.shape
    Fp = _round_up(F, 128)                       # lane-dense feature axis
    C = 2 * Fp
    f32 = jnp.float32
    mm_dtype = jnp.bfloat16 if use_bf16 else f32
    feat_dtype = mm_dtype                        # Kernel-B feature storage dtype
    isz = 2 if use_bf16 else 4

    # ---- tile selection (generation-aware VMEM budget) ----------------------
    budget = int(_vmem_capacity_bytes() * 0.55)
    if N <= 1024:
        Np = _round_up(N, 16)                    # 16: bf16-safe sublane packing
        tile_m = tile_k = tile_b = Np            # single-tile grids
    else:
        tile_m = 512                             # ~85% of HBM roofline at 512+
        Np = _round_up(N, tile_m)
        # Prefer whole-row adj slabs (no k loop); else largest k tile that fits
        # next to the resident RHS inside the VMEM budget.
        fixed = 2 * Np * C * isz + tile_m * C * 4 + 12 * tile_m * Fp * 4
        avail = budget - fixed
        tile_k = max(512, min(Np, (avail // (2 * tile_m * isz)) // 512 * 512))
        while Np % tile_k:
            tile_k -= 512
        tile_b = next(t for t in (2048, 1024, 512) if Np % t == 0)
        # TODO(synk): for graphs so large that the resident RHS (Np*2Fp) itself
        # exceeds the VMEM budget, fall back to k-streaming the RHS.

    adj_p = jnp.zeros((Np, Np), f32).at[:N, :N].set(adj.astype(f32))
    x_p = jnp.zeros((Np, Fp), f32).at[:N, :F].set(x.astype(f32))

    # Degrees = column sums (matches torch.sparse.sum(A, 0); adj symmetric) —
    # computed once here so the kernels never transpose.  Self-loop identity
    # folded analytically: colsum(W + I) = deg + 1.
    deg = jnp.sum(adj_p, axis=0).reshape(Np, 1)
    dsc = lax.rsqrt(deg + 1.0)                        # (deg+1)^-1/2, finite
    dinv = 1.0 / jnp.where(deg > 0, deg, 1.0)         # guard isolated/padded rows
    # TODO(synk): PyTorch reference yields inf/NaN for isolated nodes here.

    adj_mm = adj_p.astype(mm_dtype)
    rhs = jnp.concatenate([dsc * x_p, dinv * x_p], axis=1).astype(mm_dtype)
    fsct = x_p

    # ---- 3 GCN hops + 4 scattering (lazy random walk) hops ------------------
    # One fused kernel per hop; each adj streaming pass serves both chains and
    # its epilogue emits the next hop's RHS directly.  The 4th hop's GCN half
    # is a cheap by-product (its output is simply dropped).
    gcn_feats, sct_diffs = [], []
    for _ in range(4):
        rhs, g, fsct, d = _fused_hop(adj_mm, rhs, fsct, dsc, dinv,
                                     fp=Fp, tile_m=tile_m, tile_k=tile_k,
                                     feat_dtype=feat_dtype)
        gcn_feats.append(g)
        sct_diffs.append(d)
    g1, g2, g3 = gcn_feats[0], gcn_feats[1], gcn_feats[2]
    d1, d2, d3 = sct_diffs[1], sct_diffs[2], sct_diffs[3]   # sct[k-1] - sct[k]

    # ---- fused attention + MLP ----------------------------------------------
    a1 = jnp.zeros((1, Fp), f32).at[0, :F].set(a_vec[:F, 0].astype(f32))
    a2 = jnp.zeros((1, Fp), f32).at[0, :F].set(a_vec[F:, 0].astype(f32))
    w1_p = jnp.zeros((Fp, Fp), f32).at[:F, :F].set(w1.astype(f32)).astype(mm_dtype)
    w2_p = jnp.zeros((Fp, Fp), f32).at[:F, :F].set(w2.astype(f32)).astype(mm_dtype)
    b1_p = jnp.zeros((1, Fp), f32).at[0, :F].set(b1.astype(f32))
    b2_p = jnp.zeros((1, Fp), f32).at[0, :F].set(b2.astype(f32))

    y = _attention_mlp(x_p.astype(feat_dtype), g1, g2, g3, d1, d2, d3,
                       a1, a2, w1_p, b1_p, w2_p, b2_p, tile_b)
    return y[:N, :F]


# --------------------------------------------------------------------------- #
# Pure-JAX reference mirroring the PyTorch forward (dense adjacency)           #
# --------------------------------------------------------------------------- #
def sct_conv_reference(adj, x, a_vec, w1, b1, w2, b2):
    N, F = x.shape
    a_gcn = adj + jnp.eye(N, dtype=adj.dtype)
    d_gcn = (jnp.sum(a_gcn, axis=0) ** -0.5)[:, None]
    f = x
    gcn_feats = []
    for _ in range(3):
        f = (a_gcn @ (f * d_gcn)) * d_gcn
        gcn_feats.append(f)
    leaky = lambda z: jnp.where(z > 0, z, 0.01 * z)
    h_list = [leaky(g) for g in gcn_feats]

    d_inv = (1.0 / jnp.sum(adj, axis=0))[:, None]
    fp = x
    scts = []
    for _ in range(4):
        fp = 0.5 * fp + 0.5 * (adj @ (d_inv * fp))
        scts.append(fp)
    s_list = [jnp.abs(scts[0] - scts[1]),
              jnp.abs(scts[1] - scts[2]),
              jnp.abs(scts[2] - scts[3])]

    feats6 = h_list + s_list
    a_in = jnp.stack([jnp.concatenate([x, fk], axis=1) for fk in feats6], axis=1)
    e = jnp.squeeze(jnp.maximum(a_in, 0.0) @ a_vec, axis=2)          # [N, 6]
    att = jax.nn.softmax(e, axis=1)[:, :, None]
    h_all = jnp.stack(feats6, axis=1)                                # [N, 6, F]
    h_prime = jnp.mean(att * h_all, axis=1)
    y = leaky(h_prime @ w1 + b1)
    y = leaky(y @ w2 + b2)
    return y


if __name__ == "__main__":
    N, F = 16, 32
    key = jax.random.PRNGKey(0)
    k_adj, k_x, k_a, k_w1, k_b1, k_w2, k_b2 = jax.random.split(key, 7)

    # Symmetric weighted adjacency, zero diagonal, strictly positive degrees.
    u = jax.random.uniform(k_adj, (N, N), dtype=jnp.float32)
    adj = 0.5 * (u + u.T)
    adj = adj * (1.0 - jnp.eye(N, dtype=jnp.float32))

    x = jax.random.normal(k_x, (N, F), dtype=jnp.float32)

    # Parameters (module init shapes; `a` is zeros in __init__, use small random
    # values so the attention path is actually exercised).
    a_vec = 0.1 * jax.random.normal(k_a, (2 * F, 1), dtype=jnp.float32)
    w1 = jax.random.normal(k_w1, (F, F), dtype=jnp.float32) / jnp.sqrt(F)  # = W1.T
    b1 = 0.1 * jax.random.normal(k_b1, (F,), dtype=jnp.float32)
    w2 = jax.random.normal(k_w2, (F, F), dtype=jnp.float32) / jnp.sqrt(F)  # = W2.T
    b2 = 0.1 * jax.random.normal(k_b2, (F,), dtype=jnp.float32)

    ref = sct_conv_reference(adj, x, a_vec, w1, b1, w2, b2)

    # f32 path (exact softmax reciprocal; MXU f32 accumulation).
    out = jax.block_until_ready(sct_conv(adj, x, a_vec, w1, b1, w2, b2,
                                         use_bf16=False))
    np.testing.assert_allclose(np.asarray(out), np.asarray(ref),
                               rtol=1e-3, atol=1e-3)

    # bf16 path (bf16 adjacency / RHS / feature storage, f32 accumulation).
    out_bf16 = jax.block_until_ready(sct_conv(adj, x, a_vec, w1, b1, w2, b2,
                                              use_bf16=True))
    np.testing.assert_allclose(np.asarray(out_bf16), np.asarray(ref),
                               rtol=1e-1, atol=6e-2)

    print("KERNEL_OK")
</pallas_src>

<mosaic_0001>
module attributes {stable_mosaic.version = 11 : i64} {
  func.func @_hop_kernel(%arg0: i32, %arg1: i32, %arg2: memref<16x16xf32, #tpu.memory_space<vmem>>, %arg3: memref<16x256xf32, #tpu.memory_space<vmem>>, %arg4: memref<16x128xf32, #tpu.memory_space<vmem>>, %arg5: memref<16x128xf32, #tpu.memory_space<vmem>>, %arg6: memref<16x1xf32, #tpu.memory_space<vmem>>, %arg7: memref<16x1xf32, #tpu.memory_space<vmem>>, %arg8: memref<16x256xf32, #tpu.memory_space<vmem>>, %arg9: memref<16x128xf32, #tpu.memory_space<vmem>>, %arg10: memref<16x128xf32, #tpu.memory_space<vmem>>, %arg11: memref<16x128xf32, #tpu.memory_space<vmem>>, %arg12: memref<16x256xf32, #tpu.memory_space<vmem>>) attributes {dimension_semantics = [#tpu.dimension_semantics<parallel>, #tpu.dimension_semantics<arbitrary>], iteration_bounds = array<i64: 1, 1>, scalar_prefetch = 0 : i64, scratch_operands = 1 : i64, tpu.core_type = #tpu.core_type<tc>, window_params = [{transform_indices = @transform_0, window_bounds = array<i64: 16, 16>}, {pipeline_mode = #tpu.pipeline_mode<synchronous>, transform_indices = @transform_1, window_bounds = array<i64: 16, 256>}, {transform_indices = @transform_2, window_bounds = array<i64: 16, 128>}, {transform_indices = @transform_3, window_bounds = array<i64: 16, 128>}, {transform_indices = @transform_4, window_bounds = array<i64: 16, 1>}, {transform_indices = @transform_5, window_bounds = array<i64: 16, 1>}, {transform_indices = @transform_6, window_bounds = array<i64: 16, 256>}, {transform_indices = @transform_7, window_bounds = array<i64: 16, 128>}, {transform_indices = @transform_8, window_bounds = array<i64: 16, 128>}, {transform_indices = @transform_9, window_bounds = array<i64: 16, 128>}]} {
    %c0_i32 = arith.constant 0 : i32
    %0 = arith.cmpi eq, %arg1, %c0_i32 : i32
    %1 = arith.extui %0 : i1 to i32
    %c0_i32_0 = arith.constant 0 : i32
    %2 = arith.cmpi ne, %1, %c0_i32_0 : i32
    scf.if %2 {
      %cst_9 = arith.constant 0.000000e+00 : f32
      %15 = vector.broadcast %cst_9 : f32 to vector<16x256xf32>
      %c0_10 = arith.constant 0 : index
      %c0_11 = arith.constant 0 : index
      %16 = vector.load %arg12[%c0_10, %c0_11] : memref<16x256xf32, #tpu.memory_space<vmem>>, vector<16x256xf32>
      tpu.vector_store %arg12[%c0_10, %c0_11], %15 {strides = array<i32>} : memref<16x256xf32, #tpu.memory_space<vmem>>, vector<16x256xf32>,
    } else {
    }
    %c16_i32 = arith.constant 16 : i32
    %3 = arith.muli %arg1, %c16_i32 : i32
    %4 = tpu.assume_multiple %3, 16 : i32
    %c0 = arith.constant 0 : index
    %c0_1 = arith.constant 0 : index
    %5 = vector.load %arg12[%c0, %c0_1] : memref<16x256xf32, #tpu.memory_space<vmem>>, vector<16x256xf32>
    %c0_2 = arith.constant 0 : index
    %c0_3 = arith.constant 0 : index
    %6 = vector.load %arg2[%c0_2, %c0_3] : memref<16x16xf32, #tpu.memory_space<vmem>>, vector<16x16xf32>
    %7 = arith.index_cast %4 : i32 to index
    %c0_4 = arith.constant 0 : index
    %8 = vector.load %arg3[%7, %c0_4] : memref<16x256xf32, #tpu.memory_space<vmem>>, vector<16x256xf32>
    %cst = arith.constant dense<0.000000e+00> : vector<16x256xf32>
    %9 = tpu.matmul %6, %8, %cst {dimension_numbers = #tpu.dot_dimension_numbers<[1], [0], [0], [1], [0, 0, 1, 1], [], []>} : vector<16x16xf32>, vector<16x256xf32>, vector<16x256xf32> -> vector<16x256xf32>
    %10 = arith.addf %5, %9 : vector<16x256xf32>
    %c0_5 = arith.constant 0 : index
    %c0_6 = arith.constant 0 : index
    %11 = vector.load %arg12[%c0_5, %c0_6] : memref<16x256xf32, #tpu.memory_space<vmem>>, vector<16x256xf32>
    tpu.vector_store %arg12[%c0_5, %c0_6], %10 {strides = array<i32>} : memref<16x256xf32, #tpu.memory_space<vmem>>, vector<16x256xf32>,
    %c0_i32_7 = arith.constant 0 : i32
    %12 = arith.cmpi eq, %arg1, %c0_i32_7 : i32
    %13 = arith.extui %12 : i1 to i32
    %c0_i32_8 = arith.constant 0 : i32
    %14 = arith.cmpi ne, %13, %c0_i32_8 : i32
    scf.if %14 {
      %c0_9 = arith.constant 0 : index
      %c0_10 = arith.constant 0 : index
      %15 = vector.load %arg12[%c0_9, %c0_10] : memref<16x256xf32, #tpu.memory_space<vmem>>, vector<16x256xf32>
      %c0_11 = arith.constant 0 : index
      %c0_12 = arith.constant 0 : index
      %16 = vector.load %arg6[%c0_11, %c0_12] : memref<16x1xf32, #tpu.memory_space<vmem>>, vector<16x1xf32>
      %17 = vector.extract_strided_slice %15 {offsets = [0, 0], sizes = [16, 128], strides = [1, 1]} : vector<16x256xf32> to vector<16x128xf32>
      %c0_13 = arith.constant 0 : index
      %c0_14 = arith.constant 0 : index
      %18 = vector.load %arg4[%c0_13, %c0_14] : memref<16x128xf32, #tpu.memory_space<vmem>>, vector<16x128xf32>
      %19 = arith.addf %17, %18 : vector<16x128xf32>
      %20 = vector.broadcast %16 : vector<16x1xf32> to vector<16x128xf32>
      %21 = arith.mulf %20, %19 : vector<16x128xf32>
      %c0_15 = arith.constant 0 : index
      %c0_16 = arith.constant 0 : index
      %22 = vector.load %arg5[%c0_15, %c0_16] : memref<16x128xf32, #tpu.memory_space<vmem>>, vector<16x128xf32>
      %cst_17 = arith.constant 5.000000e-01 : f32
      %23 = vector.broadcast %cst_17 : f32 to vector<16x128xf32>
      %24 = arith.mulf %23, %22 : vector<16x128xf32>
      %25 = vector.extract_strided_slice %15 {offsets = [0, 128], sizes = [16, 128], strides = [1, 1]} : vector<16x256xf32> to vector<16x128xf32>
      %cst_18 = arith.constant 5.000000e-01 : f32
      %26 = vector.broadcast %cst_18 : f32 to vector<16x128xf32>
      %27 = arith.mulf %26, %25 : vector<16x128xf32>
      %28 = arith.addf %24, %27 : vector<16x128xf32>
      %c0_19 = arith.constant 0 : index
      %c0_20 = arith.constant 0 : index
      %29 = vector.load %arg9[%c0_19, %c0_20] : memref<16x128xf32, #tpu.memory_space<vmem>>, vector<16x128xf32>
      tpu.vector_store %arg9[%c0_19, %c0_20], %21 {strides = array<i32>} : memref<16x128xf32, #tpu.memory_space<vmem>>, vector<16x128xf32>,
      %c0_21 = arith.constant 0 : index
      %c0_22 = arith.constant 0 : index
      %30 = vector.load %arg10[%c0_21, %c0_22] : memref<16x128xf32, #tpu.memory_space<vmem>>, vector<16x128xf32>
      tpu.vector_store %arg10[%c0_21, %c0_22], %28 {strides = array<i32>} : memref<16x128xf32, #tpu.memory_space<vmem>>, vector<16x128xf32>,
      %31 = arith.subf %22, %28 : vector<16x128xf32>
      %c0_23 = arith.constant 0 : index
      %c0_24 = arith.constant 0 : index
      %32 = vector.load %arg11[%c0_23, %c0_24] : memref<16x128xf32, #tpu.memory_space<vmem>>, vector<16x128xf32>
      tpu.vector_store %arg11[%c0_23, %c0_24], %31 {strides = array<i32>} : memref<16x128xf32, #tpu.memory_space<vmem>>, vector<16x128xf32>,
      %33 = vector.broadcast %16 : vector<16x1xf32> to vector<16x128xf32>
      %34 = arith.mulf %33, %21 : vector<16x128xf32>
      %c0_25 = arith.constant 0 : index
      %c0_26 = arith.constant 0 : index
      %35 = vector.load %arg8[%c0_25, %c0_26] : memref<16x256xf32, #tpu.memory_space<vmem>>, vector<16x128xf32>
      tpu.vector_store %arg8[%c0_25, %c0_26], %34 {strides = array<i32>} : memref<16x256xf32, #tpu.memory_space<vmem>>, vector<16x128xf32>,
      %c0_27 = arith.constant 0 : index
      %c0_28 = arith.constant 0 : index
      %36 = vector.load %arg7[%c0_27, %c0_28] : memref<16x1xf32, #tpu.memory_space<vmem>>, vector<16x1xf32>
      %37 = vector.broadcast %36 : vector<16x1xf32> to vector<16x128xf32>
      %38 = arith.mulf %37, %28 : vector<16x128xf32>
      %c0_29 = arith.constant 0 : index
      %c128 = arith.constant 128 : index
      %39 = vector.load %arg8[%c0_29, %c128] : memref<16x256xf32, #tpu.memory_space<vmem>>, vector<16x128xf32>
      tpu.vector_store %arg8[%c0_29, %c128], %38 {strides = array<i32>} : memref<16x256xf32, #tpu.memory_space<vmem>>, vector<16x128xf32>,
    } else {
    }
    return
  }
  func.func @transform_0(%arg0: i32, %arg1: i32) -> (i32, i32) {
    %c0_i32 = arith.constant 0 : i32
    return %arg0, %arg1 : i32, i32
  }
  func.func @transform_1(%arg0: i32, %arg1: i32) -> (i32, i32) {
    %c0_i32 = arith.constant 0 : i32
    %c0_i32_0 = arith.constant 0 : i32
    %c0_i32_1 = arith.constant 0 : i32
    return %c0_i32, %c0_i32_0 : i32, i32
  }
  func.func @transform_2(%arg0: i32, %arg1: i32) -> (i32, i32) {
    %c0_i32 = arith.constant 0 : i32
    %c0_i32_0 = arith.constant 0 : i32
    return %arg0, %c0_i32 : i32, i32
  }
  func.func @transform_3(%arg0: i32, %arg1: i32) -> (i32, i32) {
    %c0_i32 = arith.constant 0 : i32
    %c0_i32_0 = arith.constant 0 : i32
    return %arg0, %c0_i32 : i32, i32
  }
  func.func @transform_4(%arg0: i32, %arg1: i32) -> (i32, i32) {
    %c0_i32 = arith.constant 0 : i32
    %c0_i32_0 = arith.constant 0 : i32
    return %arg0, %c0_i32 : i32, i32
  }
  func.func @transform_5(%arg0: i32, %arg1: i32) -> (i32, i32) {
    %c0_i32 = arith.constant 0 : i32
    %c0_i32_0 = arith.constant 0 : i32
    return %arg0, %c0_i32 : i32, i32
  }
  func.func @transform_6(%arg0: i32, %arg1: i32) -> (i32, i32) {
    %c0_i32 = arith.constant 0 : i32
    %c0_i32_0 = arith.constant 0 : i32
    return %arg0, %c0_i32 : i32, i32
  }
  func.func @transform_7(%arg0: i32, %arg1: i32) -> (i32, i32) {
    %c0_i32 = arith.constant 0 : i32
    %c0_i32_0 = arith.constant 0 : i32
    return %arg0, %c0_i32 : i32, i32
  }
  func.func @transform_8(%arg0: i32, %arg1: i32) -> (i32, i32) {
    %c0_i32 = arith.constant 0 : i32
    %c0_i32_0 = arith.constant 0 : i32
    return %arg0, %c0_i32 : i32, i32
  }
  func.func @transform_9(%arg0: i32, %arg1: i32) -> (i32, i32) {
    %c0_i32 = arith.constant 0 : i32
    %c0_i32_0 = arith.constant 0 : i32
    return %arg0, %c0_i32 : i32, i32
  }
}

module attributes {stable_mosaic.version = 11 : i64} {
  func.func @_hop_kernel(%arg0: i32, %arg1: i32, %arg2: memref<16x16xf32, #tpu.memory_space<vmem>>, %arg3: memref<16x256xf32, #tpu.memory_space<vmem>>, %arg4: memref<16x128xf32, #tpu.memory_space<vmem>>, %arg5: memref<16x128xf32, #tpu.memory_space<vmem>>, %arg6: memref<16x1xf32, #tpu.memory_space<vmem>>, %arg7: memref<16x1xf32, #tpu.memory_space<vmem>>, %arg8: memref<16x256xf32, #tpu.memory_space<vmem>>, %arg9: memref<16x128xf32, #tpu.memory_space<vmem>>, %arg10: memref<16x128xf32, #tpu.memory_space<vmem>>, %arg11: memref<16x128xf32, #tpu.memory_space<vmem>>, %arg12: memref<16x256xf32, #tpu.memory_space<vmem>>) attributes {dimension_semantics = [#tpu.dimension_semantics<parallel>, #tpu.dimension_semantics<arbitrary>], iteration_bounds = array<i64: 1, 1>, scalar_prefetch = 0 : i64, scratch_operands = 1 : i64, tpu.core_type = #tpu.core_type<tc>, window_params = [{transform_indices = @transform_0, window_bounds = array<i64: 16, 16>}, {pipeline_mode = #tpu.pipeline_mode<synchronous>, transform_indices = @transform_1, window_bounds = array<i64: 16, 256>}, {transform_indices = @transform_2, window_bounds = array<i64: 16, 128>}, {transform_indices = @transform_3, window_bounds = array<i64: 16, 128>}, {transform_indices = @transform_4, window_bounds = array<i64: 16, 1>}, {transform_indices = @transform_5, window_bounds = array<i64: 16, 1>}, {transform_indices = @transform_6, window_bounds = array<i64: 16, 256>}, {transform_indices = @transform_7, window_bounds = array<i64: 16, 128>}, {transform_indices = @transform_8, window_bounds = array<i64: 16, 128>}, {transform_indices = @transform_9, window_bounds = array<i64: 16, 128>}]} {
    %c0_i32 = arith.constant 0 : i32
    %0 = arith.cmpi eq, %arg1, %c0_i32 : i32
    %1 = arith.extui %0 : i1 to i32
    %c0_i32_0 = arith.constant 0 : i32
    %2 = arith.cmpi ne, %1, %c0_i32_0 : i32
    scf.if %2 {
      %cst_9 = arith.constant 0.000000e+00 : f32
      %15 = vector.broadcast %cst_9 : f32 to vector<16x256xf32>
      %c0_10 = arith.constant 0 : index
      %c0_11 = arith.constant 0 : index
      %16 = vector.load %arg12[%c0_10, %c0_11] : memref<16x256xf32, #tpu.memory_space<vmem>>, vector<16x256xf32>
      tpu.vector_store %arg12[%c0_10, %c0_11], %15 {strides = array<i32>} : memref<16x256xf32, #tpu.memory_space<vmem>>, vector<16x256xf32>,
    } else {
    }
    %c16_i32 = arith.constant 16 : i32
    %3 = arith.muli %arg1, %c16_i32 : i32
    %4 = tpu.assume_multiple %3, 16 : i32
    %c0 = arith.constant 0 : index
    %c0_1 = arith.constant 0 : index
    %5 = vector.load %arg12[%c0, %c0_1] : memref<16x256xf32, #tpu.memory_space<vmem>>, vector<16x256xf32>
    %c0_2 = arith.constant 0 : index
    %c0_3 = arith.constant 0 : index
    %6 = vector.load %arg2[%c0_2, %c0_3] : memref<16x16xf32, #tpu.memory_space<vmem>>, vector<16x16xf32>
    %7 = arith.index_cast %4 : i32 to index
    %c0_4 = arith.constant 0 : index
    %8 = vector.load %arg3[%7, %c0_4] : memref<16x256xf32, #tpu.memory_space<vmem>>, vector<16x256xf32>
    %cst = arith.constant dense<0.000000e+00> : vector<16x256xf32>
    %9 = tpu.matmul %6, %8, %cst {dimension_numbers = #tpu.dot_dimension_numbers<[1], [0], [0], [1], [0, 0, 1, 1], [], []>} : vector<16x16xf32>, vector<16x256xf32>, vector<16x256xf32> -> vector<16x256xf32>
    %10 = arith.addf %5, %9 : vector<16x256xf32>
    %c0_5 = arith.constant 0 : index
    %c0_6 = arith.constant 0 : index
    %11 = vector.load %arg12[%c0_5, %c0_6] : memref<16x256xf32, #tpu.memory_space<vmem>>, vector<16x256xf32>
    tpu.vector_store %arg12[%c0_5, %c0_6], %10 {strides = array<i32>} : memref<16x256xf32, #tpu.memory_space<vmem>>, vector<16x256xf32>,
    %c0_i32_7 = arith.constant 0 : i32
    %12 = arith.cmpi eq, %arg1, %c0_i32_7 : i32
    %13 = arith.extui %12 : i1 to i32
    %c0_i32_8 = arith.constant 0 : i32
    %14 = arith.cmpi ne, %13, %c0_i32_8 : i32
    scf.if %14 {
      %c0_9 = arith.constant 0 : index
      %c0_10 = arith.constant 0 : index
      %15 = vector.load %arg12[%c0_9, %c0_10] : memref<16x256xf32, #tpu.memory_space<vmem>>, vector<16x256xf32>
      %c0_11 = arith.constant 0 : index
      %c0_12 = arith.constant 0 : index
      %16 = vector.load %arg6[%c0_11, %c0_12] : memref<16x1xf32, #tpu.memory_space<vmem>>, vector<16x1xf32>
      %17 = vector.extract_strided_slice %15 {offsets = [0, 0], sizes = [16, 128], strides = [1, 1]} : vector<16x256xf32> to vector<16x128xf32>
      %c0_13 = arith.constant 0 : index
      %c0_14 = arith.constant 0 : index
      %18 = vector.load %arg4[%c0_13, %c0_14] : memref<16x128xf32, #tpu.memory_space<vmem>>, vector<16x128xf32>
      %19 = arith.addf %17, %18 : vector<16x128xf32>
      %20 = vector.broadcast %16 : vector<16x1xf32> to vector<16x128xf32>
      %21 = arith.mulf %20, %19 : vector<16x128xf32>
      %c0_15 = arith.constant 0 : index
      %c0_16 = arith.constant 0 : index
      %22 = vector.load %arg5[%c0_15, %c0_16] : memref<16x128xf32, #tpu.memory_space<vmem>>, vector<16x128xf32>
      %cst_17 = arith.constant 5.000000e-01 : f32
      %23 = vector.broadcast %cst_17 : f32 to vector<16x128xf32>
      %24 = arith.mulf %23, %22 : vector<16x128xf32>
      %25 = vector.extract_strided_slice %15 {offsets = [0, 128], sizes = [16, 128], strides = [1, 1]} : vector<16x256xf32> to vector<16x128xf32>
      %cst_18 = arith.constant 5.000000e-01 : f32
      %26 = vector.broadcast %cst_18 : f32 to vector<16x128xf32>
      %27 = arith.mulf %26, %25 : vector<16x128xf32>
      %28 = arith.addf %24, %27 : vector<16x128xf32>
      %c0_19 = arith.constant 0 : index
      %c0_20 = arith.constant 0 : index
      %29 = vector.load %arg9[%c0_19, %c0_20] : memref<16x128xf32, #tpu.memory_space<vmem>>, vector<16x128xf32>
      tpu.vector_store %arg9[%c0_19, %c0_20], %21 {strides = array<i32>} : memref<16x128xf32, #tpu.memory_space<vmem>>, vector<16x128xf32>,
      %c0_21 = arith.constant 0 : index
      %c0_22 = arith.constant 0 : index
      %30 = vector.load %arg10[%c0_21, %c0_22] : memref<16x128xf32, #tpu.memory_space<vmem>>, vector<16x128xf32>
      tpu.vector_store %arg10[%c0_21, %c0_22], %28 {strides = array<i32>} : memref<16x128xf32, #tpu.memory_space<vmem>>, vector<16x128xf32>,
      %31 = arith.subf %22, %28 : vector<16x128xf32>
      %c0_23 = arith.constant 0 : index
      %c0_24 = arith.constant 0 : index
      %32 = vector.load %arg11[%c0_23, %c0_24] : memref<16x128xf32, #tpu.memory_space<vmem>>, vector<16x128xf32>
      tpu.vector_store %arg11[%c0_23, %c0_24], %31 {strides = array<i32>} : memref<16x128xf32, #tpu.memory_space<vmem>>, vector<16x128xf32>,
      %33 = vector.broadcast %16 : vector<16x1xf32> to vector<16x128xf32>
      %34 = arith.mulf %33, %21 : vector<16x128xf32>
      %c0_25 = arith.constant 0 : index
      %c0_26 = arith.constant 0 : index
      %35 = vector.load %arg8[%c0_25, %c0_26] : memref<16x256xf32, #tpu.memory_space<vmem>>, vector<16x128xf32>
      tpu.vector_store %arg8[%c0_25, %c0_26], %34 {strides = array<i32>} : memref<16x256xf32, #tpu.memory_space<vmem>>, vector<16x128xf32>,
      %c0_27 = arith.constant 0 : index
      %c0_28 = arith.constant 0 : index
      %36 = vector.load %arg7[%c0_27, %c0_28] : memref<16x1xf32, #tpu.memory_space<vmem>>, vector<16x1xf32>
      %37 = vector.broadcast %36 : vector<16x1xf32> to vector<16x128xf32>
      %38 = arith.mulf %37, %28 : vector<16x128xf32>
      %c0_29 = arith.constant 0 : index
      %c128 = arith.constant 128 : index
      %39 = vector.load %arg8[%c0_29, %c128] : memref<16x256xf32, #tpu.memory_space<vmem>>, vector<16x128xf32>
      tpu.vector_store %arg8[%c0_29, %c128], %38 {strides = array<i32>} : memref<16x256xf32, #tpu.memory_space<vmem>>, vector<16x128xf32>,
    } else {
    }
    return
  }
  func.func @transform_0(%arg0: i32, %arg1: i32) -> (i32, i32) {
    %c0_i32 = arith.constant 0 : i32
    return %arg0, %arg1 : i32, i32
  }
  func.func @transform_1(%arg0: i32, %arg1: i32) -> (i32, i32) {
    %c0_i32 = arith.constant 0 : i32
    %c0_i32_0 = arith.constant 0 : i32
    %c0_i32_1 = arith.constant 0 : i32
    return %c0_i32, %c0_i32_0 : i32, i32
  }
  func.func @transform_2(%arg0: i32, %arg1: i32) -> (i32, i32) {
    %c0_i32 = arith.constant 0 : i32
    %c0_i32_0 = arith.constant 0 : i32
    return %arg0, %c0_i32 : i32, i32
  }
  func.func @transform_3(%arg0: i32, %arg1: i32) -> (i32, i32) {
    %c0_i32 = arith.constant 0 : i32
    %c0_i32_0 = arith.constant 0 : i32
    return %arg0, %c0_i32 : i32, i32
  }
  func.func @transform_4(%arg0: i32, %arg1: i32) -> (i32, i32) {
    %c0_i32 = arith.constant 0 : i32
    %c0_i32_0 = arith.constant 0 : i32
    return %arg0, %c0_i32 : i32, i32
  }
  func.func @transform_5(%arg0: i32, %arg1: i32) -> (i32, i32) {
    %c0_i32 = arith.constant 0 : i32
    %c0_i32_0 = arith.constant 0 : i32
    return %arg0, %c0_i32 : i32, i32
  }
  func.func @transform_6(%arg0: i32, %arg1: i32) -> (i32, i32) {
    %c0_i32 = arith.constant 0 : i32
    %c0_i32_0 = arith.constant 0 : i32
    return %arg0, %c0_i32 : i32, i32
  }
  func.func @transform_7(%arg0: i32, %arg1: i32) -> (i32, i32) {
    %c0_i32 = arith.constant 0 : i32
    %c0_i32_0 = arith.constant 0 : i32
    return %arg0, %c0_i32 : i32, i32
  }
  func.func @transform_8(%arg0: i32, %arg1: i32) -> (i32, i32) {
    %c0_i32 = arith.constant 0 : i32
    %c0_i32_0 = arith.constant 0 : i32
    return %arg0, %c0_i32 : i32, i32
  }
  func.func @transform_9(%arg0: i32, %arg1: i32) -> (i32, i32) {
    %c0_i32 = arith.constant 0 : i32
    %c0_i32_0 = arith.constant 0 : i32
    return %arg0, %c0_i32 : i32, i32
  }
}

module attributes {stable_mosaic.version = 11 : i64} {
  func.func @_attention_mlp_kernel(%arg0: i32, %arg1: memref<16x128xf32, #tpu.memory_space<vmem>>, %arg2: memref<16x128xf32, #tpu.memory_space<vmem>>, %arg3: memref<16x128xf32, #tpu.memory_space<vmem>>, %arg4: memref<16x128xf32, #tpu.memory_space<vmem>>, %arg5: memref<16x128xf32, #tpu.memory_space<vmem>>, %arg6: memref<16x128xf32, #tpu.memory_space<vmem>>, %arg7: memref<16x128xf32, #tpu.memory_space<vmem>>, %arg8: memref<1x128xf32, #tpu.memory_space<vmem>>, %arg9: memref<1x128xf32, #tpu.memory_space<vmem>>, %arg10: memref<128x128xf32, #tpu.memory_space<vmem>>, %arg11: memref<1x128xf32, #tpu.memory_space<vmem>>, %arg12: memref<128x128xf32, #tpu.memory_space<vmem>>, %arg13: memref<1x128xf32, #tpu.memory_space<vmem>>, %arg14: memref<16x128xf32, #tpu.memory_space<vmem>>) attributes {dimension_semantics = [#tpu.dimension_semantics<parallel>], iteration_bounds = array<i64: 1>, scalar_prefetch = 0 : i64, scratch_operands = 0 : i64, tpu.core_type = #tpu.core_type<tc>, window_params = [{transform_indices = @transform_0, window_bounds = array<i64: 16, 128>}, {transform_indices = @transform_1, window_bounds = array<i64: 16, 128>}, {transform_indices = @transform_2, window_bounds = array<i64: 16, 128>}, {transform_indices = @transform_3, window_bounds = array<i64: 16, 128>}, {transform_indices = @transform_4, window_bounds = array<i64: 16, 128>}, {transform_indices = @transform_5, window_bounds = array<i64: 16, 128>}, {transform_indices = @transform_6, window_bounds = array<i64: 16, 128>}, {pipeline_mode = #tpu.pipeline_mode<synchronous>, transform_indices = @transform_7, window_bounds = array<i64: 1, 128>}, {pipeline_mode = #tpu.pipeline_mode<synchronous>, transform_indices = @transform_8, window_bounds = array<i64: 1, 128>}, {pipeline_mode = #tpu.pipeline_mode<synchronous>, transform_indices = @transform_9, window_bounds = array<i64: 128, 128>}, {pipeline_mode = #tpu.pipeline_mode<synchronous>, transform_indices = @transform_10, window_bounds = array<i64: 1, 128>}, {pipeline_mode = #tpu.pipeline_mode<synchronous>, transform_indices = @transform_11, window_bounds = array<i64: 128, 128>}, {pipeline_mode = #tpu.pipeline_mode<synchronous>, transform_indices = @transform_12, window_bounds = array<i64: 1, 128>}, {transform_indices = @transform_13, window_bounds = array<i64: 16, 128>}]} {
    %c0 = arith.constant 0 : index
    %c0_0 = arith.constant 0 : index
    %0 = vector.load %arg1[%c0, %c0_0] : memref<16x128xf32, #tpu.memory_space<vmem>>, vector<16x128xf32>
    %c0_1 = arith.constant 0 : index
    %c0_2 = arith.constant 0 : index
    %1 = vector.load %arg2[%c0_1, %c0_2] : memref<16x128xf32, #tpu.memory_space<vmem>>, vector<16x128xf32>
    %cst = arith.constant 0.000000e+00 : f32
    %2 = vector.broadcast %cst : f32 to vector<16x128xf32>
    %3 = arith.cmpf ogt, %1, %2 : vector<16x128xf32>
    %cst_3 = arith.constant 0.00999999977 : f32
    %4 = vector.broadcast %cst_3 : f32 to vector<16x128xf32>
    %5 = arith.mulf %4, %1 : vector<16x128xf32>
    %6 = arith.select %3, %1, %5 : vector<16x128xi1>, vector<16x128xf32>
    %c0_4 = arith.constant 0 : index
    %c0_5 = arith.constant 0 : index
    %7 = vector.load %arg3[%c0_4, %c0_5] : memref<16x128xf32, #tpu.memory_space<vmem>>, vector<16x128xf32>
    %cst_6 = arith.constant 0.000000e+00 : f32
    %8 = vector.broadcast %cst_6 : f32 to vector<16x128xf32>
    %9 = arith.cmpf ogt, %7, %8 : vector<16x128xf32>
    %cst_7 = arith.constant 0.00999999977 : f32
    %10 = vector.broadcast %cst_7 : f32 to vector<16x128xf32>
    %11 = arith.mulf %10, %7 : vector<16x128xf32>
    %12 = arith.select %9, %7, %11 : vector<16x128xi1>, vector<16x128xf32>
    %c0_8 = arith.constant 0 : index
    %c0_9 = arith.constant 0 : index
    %13 = vector.load %arg4[%c0_8, %c0_9] : memref<16x128xf32, #tpu.memory_space<vmem>>, vector<16x128xf32>
    %cst_10 = arith.constant 0.000000e+00 : f32
    %14 = vector.broadcast %cst_10 : f32 to vector<16x128xf32>
    %15 = arith.cmpf ogt, %13, %14 : vector<16x128xf32>
    %cst_11 = arith.constant 0.00999999977 : f32
    %16 = vector.broadcast %cst_11 : f32 to vector<16x128xf32>
    %17 = arith.mulf %16, %13 : vector<16x128xf32>
    %18 = arith.select %15, %13, %17 : vector<16x128xi1>, vector<16x128xf32>
    %c0_12 = arith.constant 0 : index
    %c0_13 = arith.constant 0 : index
    %19 = vector.load %arg5[%c0_12, %c0_13] : memref<16x128xf32, #tpu.memory_space<vmem>>, vector<16x128xf32>
    %20 = math.absf %19 : vector<16x128xf32>
    %c0_14 = arith.constant 0 : index
    %c0_15 = arith.constant 0 : index
    %21 = vector.load %arg6[%c0_14, %c0_15] : memref<16x128xf32, #tpu.memory_space<vmem>>, vector<16x128xf32>
    %22 = math.absf %21 : vector<16x128xf32>
    %c0_16 = arith.constant 0 : index
    %c0_17 = arith.constant 0 : index
    %23 = vector.load %arg7[%c0_16, %c0_17] : memref<16x128xf32, #tpu.memory_space<vmem>>, vector<16x128xf32>
    %24 = math.absf %23 : vector<16x128xf32>
    %c0_18 = arith.constant 0 : index
    %c0_19 = arith.constant 0 : index
    %25 = vector.load %arg8[%c0_18, %c0_19] : memref<1x128xf32, #tpu.memory_space<vmem>>, vector<1x128xf32>
    %c0_20 = arith.constant 0 : index
    %c0_21 = arith.constant 0 : index
    %26 = vector.load %arg9[%c0_20, %c0_21] : memref<1x128xf32, #tpu.memory_space<vmem>>, vector<1x128xf32>
    %cst_22 = arith.constant 0.000000e+00 : f32
    %27 = vector.broadcast %cst_22 : f32 to vector<16x128xf32>
    %28 = arith.maximumf %0, %27 : vector<16x128xf32>
    %29 = vector.broadcast %25 : vector<1x128xf32> to vector<16x128xf32>
    %30 = arith.mulf %28, %29 : vector<16x128xf32>
    %cst_23 = arith.constant dense<0.000000e+00> : vector<16xf32>
    %31 = vector.multi_reduction <add>, %30, %cst_23 [1] : vector<16x128xf32> to vector<16xf32>
    %32 = vector.shape_cast %31 : vector<16xf32> to vector<16x1xf32>
    %cst_24 = arith.constant 0.000000e+00 : f32
    %33 = vector.broadcast %cst_24 : f32 to vector<16x128xf32>
    %34 = arith.maximumf %6, %33 : vector<16x128xf32>
    %35 = vector.broadcast %26 : vector<1x128xf32> to vector<16x128xf32>
    %36 = arith.mulf %34, %35 : vector<16x128xf32>
    %cst_25 = arith.constant dense<0.000000e+00> : vector<16xf32>
    %37 = vector.multi_reduction <add>, %36, %cst_25 [1] : vector<16x128xf32> to vector<16xf32>
    %38 = vector.shape_cast %37 : vector<16xf32> to vector<16x1xf32>
    %39 = arith.addf %32, %38 : vector<16x1xf32>
    %cst_26 = arith.constant 0.000000e+00 : f32
    %40 = vector.broadcast %cst_26 : f32 to vector<16x128xf32>
    %41 = arith.maximumf %12, %40 : vector<16x128xf32>
    %42 = vector.broadcast %26 : vector<1x128xf32> to vector<16x128xf32>
    %43 = arith.mulf %41, %42 : vector<16x128xf32>
    %cst_27 = arith.constant dense<0.000000e+00> : vector<16xf32>
    %44 = vector.multi_reduction <add>, %43, %cst_27 [1] : vector<16x128xf32> to vector<16xf32>
    %45 = vector.shape_cast %44 : vector<16xf32> to vector<16x1xf32>
    %46 = arith.addf %32, %45 : vector<16x1xf32>
    %cst_28 = arith.constant 0.000000e+00 : f32
    %47 = vector.broadcast %cst_28 : f32 to vector<16x128xf32>
    %48 = arith.maximumf %18, %47 : vector<16x128xf32>
    %49 = vector.broadcast %26 : vector<1x128xf32> to vector<16x128xf32>
    %50 = arith.mulf %48, %49 : vector<16x128xf32>
    %cst_29 = arith.constant dense<0.000000e+00> : vector<16xf32>
    %51 = vector.multi_reduction <add>, %50, %cst_29 [1] : vector<16x128xf32> to vector<16xf32>
    %52 = vector.shape_cast %51 : vector<16xf32> to vector<16x1xf32>
    %53 = arith.addf %32, %52 : vector<16x1xf32>
    %cst_30 = arith.constant 0.000000e+00 : f32
    %54 = vector.broadcast %cst_30 : f32 to vector<16x128xf32>
    %55 = arith.maximumf %20, %54 : vector<16x128xf32>
    %56 = vector.broadcast %26 : vector<1x128xf32> to vector<16x128xf32>
    %57 = arith.mulf %55, %56 : vector<16x128xf32>
    %cst_31 = arith.constant dense<0.000000e+00> : vector<16xf32>
    %58 = vector.multi_reduction <add>, %57, %cst_31 [1] : vector<16x128xf32> to vector<16xf32>
    %59 = vector.shape_cast %58 : vector<16xf32> to vector<16x1xf32>
    %60 = arith.addf %32, %59 : vector<16x1xf32>
    %cst_32 = arith.constant 0.000000e+00 : f32
    %61 = vector.broadcast %cst_32 : f32 to vector<16x128xf32>
    %62 = arith.maximumf %22, %61 : vector<16x128xf32>
    %63 = vector.broadcast %26 : vector<1x128xf32> to vector<16x128xf32>
    %64 = arith.mulf %62, %63 : vector<16x128xf32>
    %cst_33 = arith.constant dense<0.000000e+00> : vector<16xf32>
    %65 = vector.multi_reduction <add>, %64, %cst_33 [1] : vector<16x128xf32> to vector<16xf32>
    %66 = vector.shape_cast %65 : vector<16xf32> to vector<16x1xf32>
    %67 = arith.addf %32, %66 : vector<16x1xf32>
    %cst_34 = arith.constant 0.000000e+00 : f32
    %68 = vector.broadcast %cst_34 : f32 to vector<16x128xf32>
    %69 = arith.maximumf %24, %68 : vector<16x128xf32>
    %70 = vector.broadcast %26 : vector<1x128xf32> to vector<16x128xf32>
    %71 = arith.mulf %69, %70 : vector<16x128xf32>
    %cst_35 = arith.constant dense<0.000000e+00> : vector<16xf32>
    %72 = vector.multi_reduction <add>, %71, %cst_35 [1] : vector<16x128xf32> to vector<16xf32>
    %73 = vector.shape_cast %72 : vector<16xf32> to vector<16x1xf32>
    %74 = arith.addf %32, %73 : vector<16x1xf32>
    %75 = arith.maximumf %39, %46 : vector<16x1xf32>
    %76 = arith.maximumf %75, %53 : vector<16x1xf32>
    %77 = arith.maximumf %76, %60 : vector<16x1xf32>
    %78 = arith.maximumf %77, %67 : vector<16x1xf32>
    %79 = arith.maximumf %78, %74 : vector<16x1xf32>
    %80 = arith.subf %39, %79 : vector<16x1xf32>
    %81 = math.exp %80 : vector<16x1xf32>
    %82 = arith.subf %46, %79 : vector<16x1xf32>
    %83 = math.exp %82 : vector<16x1xf32>
    %84 = arith.subf %53, %79 : vector<16x1xf32>
    %85 = math.exp %84 : vector<16x1xf32>
    %86 = arith.subf %60, %79 : vector<16x1xf32>
    %87 = math.exp %86 : vector<16x1xf32>
    %88 = arith.subf %67, %79 : vector<16x1xf32>
    %89 = math.exp %88 : vector<16x1xf32>
    %90 = arith.subf %74, %79 : vector<16x1xf32>
    %91 = math.exp %90 : vector<16x1xf32>
    %92 = arith.addf %81, %83 : vector<16x1xf32>
    %93 = arith.addf %92, %85 : vector<16x1xf32>
    %94 = arith.addf %93, %87 : vector<16x1xf32>
    %95 = arith.addf %94, %89 : vector<16x1xf32>
    %96 = arith.addf %95, %91 : vector<16x1xf32>
    %cst_36 = arith.constant 0.166666672 : f32
    %97 = vector.broadcast %cst_36 : f32 to vector<16x1xf32>
    %98 = arith.divf %97, %96 : vector<16x1xf32>
    %99 = vector.broadcast %81 : vector<16x1xf32> to vector<16x128xf32>
    %100 = arith.mulf %99, %6 : vector<16x128xf32>
    %101 = vector.broadcast %83 : vector<16x1xf32> to vector<16x128xf32>
    %102 = arith.mulf %101, %12 : vector<16x128xf32>
    %103 = arith.addf %100, %102 : vector<16x128xf32>
    %104 = vector.broadcast %85 : vector<16x1xf32> to vector<16x128xf32>
    %105 = arith.mulf %104, %18 : vector<16x128xf32>
    %106 = arith.addf %103, %105 : vector<16x128xf32>
    %107 = vector.broadcast %87 : vector<16x1xf32> to vector<16x128xf32>
    %108 = arith.mulf %107, %20 : vector<16x128xf32>
    %109 = arith.addf %106, %108 : vector<16x128xf32>
    %110 = vector.broadcast %89 : vector<16x1xf32> to vector<16x128xf32>
    %111 = arith.mulf %110, %22 : vector<16x128xf32>
    %112 = arith.addf %109, %111 : vector<16x128xf32>
    %113 = vector.broadcast %91 : vector<16x1xf32> to vector<16x128xf32>
    %114 = arith.mulf %113, %24 : vector<16x128xf32>
    %115 = arith.addf %112, %114 : vector<16x128xf32>
    %116 = vector.broadcast %98 : vector<16x1xf32> to vector<16x128xf32>
    %117 = arith.mulf %115, %116 : vector<16x128xf32>
    %c0_37 = arith.constant 0 : index
    %c0_38 = arith.constant 0 : index
    %118 = vector.load %arg10[%c0_37, %c0_38] : memref<128x128xf32, #tpu.memory_space<vmem>>, vector<128x128xf32>
    %cst_39 = arith.constant dense<0.000000e+00> : vector<16x128xf32>
    %119 = tpu.matmul %117, %118, %cst_39 {dimension_numbers = #tpu.dot_dimension_numbers<[1], [0], [0], [1], [0, 0, 1, 1], [], []>} : vector<16x128xf32>, vector<128x128xf32>, vector<16x128xf32> -> vector<16x128xf32>
    %c0_40 = arith.constant 0 : index
    %c0_41 = arith.constant 0 : index
    %120 = vector.load %arg11[%c0_40, %c0_41] : memref<1x128xf32, #tpu.memory_space<vmem>>, vector<1x128xf32>
    %121 = vector.broadcast %120 : vector<1x128xf32> to vector<16x128xf32>
    %122 = arith.addf %119, %121 : vector<16x128xf32>
    %cst_42 = arith.constant 0.000000e+00 : f32
    %123 = vector.broadcast %cst_42 : f32 to vector<16x128xf32>
    %124 = arith.cmpf ogt, %122, %123 : vector<16x128xf32>
    %cst_43 = arith.constant 0.00999999977 : f32
    %125 = vector.broadcast %cst_43 : f32 to vector<16x128xf32>
    %126 = arith.mulf %125, %122 : vector<16x128xf32>
    %127 = arith.select %124, %122, %126 : vector<16x128xi1>, vector<16x128xf32>
    %c0_44 = arith.constant 0 : index
    %c0_45 = arith.constant 0 : index
    %128 = vector.load %arg12[%c0_44, %c0_45] : memref<128x128xf32, #tpu.memory_space<vmem>>, vector<128x128xf32>
    %cst_46 = arith.constant dense<0.000000e+00> : vector<16x128xf32>
    %129 = tpu.matmul %127, %128, %cst_46 {dimension_numbers = #tpu.dot_dimension_numbers<[1], [0], [0], [1], [0, 0, 1, 1], [], []>} : vector<16x128xf32>, vector<128x128xf32>, vector<16x128xf32> -> vector<16x128xf32>
    %c0_47 = arith.constant 0 : index
    %c0_48 = arith.constant 0 : index
    %130 = vector.load %arg13[%c0_47, %c0_48] : memref<1x128xf32, #tpu.memory_space<vmem>>, vector<1x128xf32>
    %131 = vector.broadcast %130 : vector<1x128xf32> to vector<16x128xf32>
    %132 = arith.addf %129, %131 : vector<16x128xf32>
    %cst_49 = arith.constant 0.000000e+00 : f32
    %133 = vector.broadcast %cst_49 : f32 to vector<16x128xf32>
    %134 = arith.cmpf ogt, %132, %133 : vector<16x128xf32>
    %cst_50 = arith.constant 0.00999999977 : f32
    %135 = vector.broadcast %cst_50 : f32 to vector<16x128xf32>
    %136 = arith.mulf %135, %132 : vector<16x128xf32>
    %137 = arith.select %134, %132, %136 : vector<16x128xi1>, vector<16x128xf32>
    %c0_51 = arith.constant 0 : index
    %c0_52 = arith.constant 0 : index
    %138 = vector.load %arg14[%c0_51, %c0_52] : memref<16x128xf32, #tpu.memory_space<vmem>>, vector<16x128xf32>
    tpu.vector_store %arg14[%c0_51, %c0_52], %137 {strides = array<i32>} : memref<16x128xf32, #tpu.memory_space<vmem>>, vector<16x128xf32>,
    return
  }
  func.func @transform_0(%arg0: i32) -> (i32, i32) {
    %c0_i32 = arith.constant 0 : i32
    %c0_i32_0 = arith.constant 0 : i32
    return %arg0, %c0_i32 : i32, i32
  }
  func.func @transform_1(%arg0: i32) -> (i32, i32) {
    %c0_i32 = arith.constant 0 : i32
    %c0_i32_0 = arith.constant 0 : i32
    return %arg0, %c0_i32 : i32, i32
  }
  func.func @transform_2(%arg0: i32) -> (i32, i32) {
    %c0_i32 = arith.constant 0 : i32
    %c0_i32_0 = arith.constant 0 : i32
    return %arg0, %c0_i32 : i32, i32
  }
  func.func @transform_3(%arg0: i32) -> (i32, i32) {
    %c0_i32 = arith.constant 0 : i32
    %c0_i32_0 = arith.constant 0 : i32
    return %arg0, %c0_i32 : i32, i32
  }
  func.func @transform_4(%arg0: i32) -> (i32, i32) {
    %c0_i32 = arith.constant 0 : i32
    %c0_i32_0 = arith.constant 0 : i32
    return %arg0, %c0_i32 : i32, i32
  }
  func.func @transform_5(%arg0: i32) -> (i32, i32) {
    %c0_i32 = arith.constant 0 : i32
    %c0_i32_0 = arith.constant 0 : i32
    return %arg0, %c0_i32 : i32, i32
  }
  func.func @transform_6(%arg0: i32) -> (i32, i32) {
    %c0_i32 = arith.constant 0 : i32
    %c0_i32_0 = arith.constant 0 : i32
    return %arg0, %c0_i32 : i32, i32
  }
  func.func @transform_7(%arg0: i32) -> (i32, i32) {
    %c0_i32 = arith.constant 0 : i32
    %c0_i32_0 = arith.constant 0 : i32
    %c0_i32_1 = arith.constant 0 : i32
    return %c0_i32, %c0_i32_0 : i32, i32
  }
  func.func @transform_8(%arg0: i32) -> (i32, i32) {
    %c0_i32 = arith.constant 0 : i32
    %c0_i32_0 = arith.constant 0 : i32
    %c0_i32_1 = arith.constant 0 : i32
    return %c0_i32, %c0_i32_0 : i32, i32
  }
  func.func @transform_9(%arg0: i32) -> (i32, i32) {
    %c0_i32 = arith.constant 0 : i32
    %c0_i32_0 = arith.constant 0 : i32
    %c0_i32_1 = arith.constant 0 : i32
    return %c0_i32, %c0_i32_0 : i32, i32
  }
  func.func @transform_10(%arg0: i32) -> (i32, i32) {
    %c0_i32 = arith.constant 0 : i32
    %c0_i32_0 = arith.constant 0 : i32
    %c0_i32_1 = arith.constant 0 : i32
    return %c0_i32, %c0_i32_0 : i32, i32
  }
  func.func @transform_11(%arg0: i32) -> (i32, i32) {
    %c0_i32 = arith.constant 0 : i32
    %c0_i32_0 = arith.constant 0 : i32
    %c0_i32_1 = arith.constant 0 : i32
    return %c0_i32, %c0_i32_0 : i32, i32
  }
  func.func @transform_12(%arg0: i32) -> (i32, i32) {
    %c0_i32 = arith.constant 0 : i32
    %c0_i32_0 = arith.constant 0 : i32
    %c0_i32_1 = arith.constant 0 : i32
    return %c0_i32, %c0_i32_0 : i32, i32
  }
  func.func @transform_13(%arg0: i32) -> (i32, i32) {
    %c0_i32 = arith.constant 0 : i32
    %c0_i32_0 = arith.constant 0 : i32
    return %arg0, %c0_i32 : i32, i32
  }
}

module attributes {stable_mosaic.version = 11 : i64} {
  func.func @_hop_kernel(%arg0: i32, %arg1: i32, %arg2: memref<16x16xf32, #tpu.memory_space<vmem>>, %arg3: memref<16x256xf32, #tpu.memory_space<vmem>>, %arg4: memref<16x128xf32, #tpu.memory_space<vmem>>, %arg5: memref<16x128xf32, #tpu.memory_space<vmem>>, %arg6: memref<16x1xf32, #tpu.memory_space<vmem>>, %arg7: memref<16x1xf32, #tpu.memory_space<vmem>>, %arg8: memref<16x256xf32, #tpu.memory_space<vmem>>, %arg9: memref<16x128xf32, #tpu.memory_space<vmem>>, %arg10: memref<16x128xf32, #tpu.memory_space<vmem>>, %arg11: memref<16x128xf32, #tpu.memory_space<vmem>>, %arg12: memref<16x256xf32, #tpu.memory_space<vmem>>) attributes {dimension_semantics = [#tpu.dimension_semantics<parallel>, #tpu.dimension_semantics<arbitrary>], iteration_bounds = array<i64: 1, 1>, scalar_prefetch = 0 : i64, scratch_operands = 1 : i64, tpu.core_type = #tpu.core_type<tc>, window_params = [{transform_indices = @transform_0, window_bounds = array<i64: 16, 16>}, {pipeline_mode = #tpu.pipeline_mode<synchronous>, transform_indices = @transform_1, window_bounds = array<i64: 16, 256>}, {transform_indices = @transform_2, window_bounds = array<i64: 16, 128>}, {transform_indices = @transform_3, window_bounds = array<i64: 16, 128>}, {transform_indices = @transform_4, window_bounds = array<i64: 16, 1>}, {transform_indices = @transform_5, window_bounds = array<i64: 16, 1>}, {transform_indices = @transform_6, window_bounds = array<i64: 16, 256>}, {transform_indices = @transform_7, window_bounds = array<i64: 16, 128>}, {transform_indices = @transform_8, window_bounds = array<i64: 16, 128>}, {transform_indices = @transform_9, window_bounds = array<i64: 16, 128>}]} {
    %c0_i32 = arith.constant 0 : i32
    %0 = arith.cmpi eq, %arg1, %c0_i32 : i32
    %1 = arith.extui %0 : i1 to i32
    %c0_i32_0 = arith.constant 0 : i32
    %2 = arith.cmpi ne, %1, %c0_i32_0 : i32
    scf.if %2 {
      %cst_9 = arith.constant 0.000000e+00 : f32
      %15 = vector.broadcast %cst_9 : f32 to vector<16x256xf32>
      %c0_10 = arith.constant 0 : index
      %c0_11 = arith.constant 0 : index
      %16 = vector.load %arg12[%c0_10, %c0_11] : memref<16x256xf32, #tpu.memory_space<vmem>>, vector<16x256xf32>
      tpu.vector_store %arg12[%c0_10, %c0_11], %15 {strides = array<i32>} : memref<16x256xf32, #tpu.memory_space<vmem>>, vector<16x256xf32>,
    } else {
    }
    %c16_i32 = arith.constant 16 : i32
    %3 = arith.muli %arg1, %c16_i32 : i32
    %4 = tpu.assume_multiple %3, 16 : i32
    %c0 = arith.constant 0 : index
    %c0_1 = arith.constant 0 : index
    %5 = vector.load %arg12[%c0, %c0_1] : memref<16x256xf32, #tpu.memory_space<vmem>>, vector<16x256xf32>
    %c0_2 = arith.constant 0 : index
    %c0_3 = arith.constant 0 : index
    %6 = vector.load %arg2[%c0_2, %c0_3] : memref<16x16xf32, #tpu.memory_space<vmem>>, vector<16x16xf32>
    %7 = arith.index_cast %4 : i32 to index
    %c0_4 = arith.constant 0 : index
    %8 = vector.load %arg3[%7, %c0_4] : memref<16x256xf32, #tpu.memory_space<vmem>>, vector<16x256xf32>
    %cst = arith.constant dense<0.000000e+00> : vector<16x256xf32>
    %9 = tpu.matmul %6, %8, %cst {dimension_numbers = #tpu.dot_dimension_numbers<[1], [0], [0], [1], [0, 0, 1, 1], [], []>} : vector<16x16xf32>, vector<16x256xf32>, vector<16x256xf32> -> vector<16x256xf32>
    %10 = arith.addf %5, %9 : vector<16x256xf32>
    %c0_5 = arith.constant 0 : index
    %c0_6 = arith.constant 0 : index
    %11 = vector.load %arg12[%c0_5, %c0_6] : memref<16x256xf32, #tpu.memory_space<vmem>>, vector<16x256xf32>
    tpu.vector_store %arg12[%c0_5, %c0_6], %10 {strides = array<i32>} : memref<16x256xf32, #tpu.memory_space<vmem>>, vector<16x256xf32>,
    %c0_i32_7 = arith.constant 0 : i32
    %12 = arith.cmpi eq, %arg1, %c0_i32_7 : i32
    %13 = arith.extui %12 : i1 to i32
    %c0_i32_8 = arith.constant 0 : i32
    %14 = arith.cmpi ne, %13, %c0_i32_8 : i32
    scf.if %14 {
      %c0_9 = arith.constant 0 : index
      %c0_10 = arith.constant 0 : index
      %15 = vector.load %arg12[%c0_9, %c0_10] : memref<16x256xf32, #tpu.memory_space<vmem>>, vector<16x256xf32>
      %c0_11 = arith.constant 0 : index
      %c0_12 = arith.constant 0 : index
      %16 = vector.load %arg6[%c0_11, %c0_12] : memref<16x1xf32, #tpu.memory_space<vmem>>, vector<16x1xf32>
      %17 = vector.extract_strided_slice %15 {offsets = [0, 0], sizes = [16, 128], strides = [1, 1]} : vector<16x256xf32> to vector<16x128xf32>
      %c0_13 = arith.constant 0 : index
      %c0_14 = arith.constant 0 : index
      %18 = vector.load %arg4[%c0_13, %c0_14] : memref<16x128xf32, #tpu.memory_space<vmem>>, vector<16x128xf32>
      %19 = arith.addf %17, %18 : vector<16x128xf32>
      %20 = vector.broadcast %16 : vector<16x1xf32> to vector<16x128xf32>
      %21 = arith.mulf %20, %19 : vector<16x128xf32>
      %c0_15 = arith.constant 0 : index
      %c0_16 = arith.constant 0 : index
      %22 = vector.load %arg5[%c0_15, %c0_16] : memref<16x128xf32, #tpu.memory_space<vmem>>, vector<16x128xf32>
      %cst_17 = arith.constant 5.000000e-01 : f32
      %23 = vector.broadcast %cst_17 : f32 to vector<16x128xf32>
      %24 = arith.mulf %23, %22 : vector<16x128xf32>
      %25 = vector.extract_strided_slice %15 {offsets = [0, 128], sizes = [16, 128], strides = [1, 1]} : vector<16x256xf32> to vector<16x128xf32>
      %cst_18 = arith.constant 5.000000e-01 : f32
      %26 = vector.broadcast %cst_18 : f32 to vector<16x128xf32>
      %27 = arith.mulf %26, %25 : vector<16x128xf32>
      %28 = arith.addf %24, %27 : vector<16x128xf32>
      %c0_19 = arith.constant 0 : index
      %c0_20 = arith.constant 0 : index
      %29 = vector.load %arg9[%c0_19, %c0_20] : memref<16x128xf32, #tpu.memory_space<vmem>>, vector<16x128xf32>
      tpu.vector_store %arg9[%c0_19, %c0_20], %21 {strides = array<i32>} : memref<16x128xf32, #tpu.memory_space<vmem>>, vector<16x128xf32>,
      %c0_21 = arith.constant 0 : index
      %c0_22 = arith.constant 0 : index
      %30 = vector.load %arg10[%c0_21, %c0_22] : memref<16x128xf32, #tpu.memory_space<vmem>>, vector<16x128xf32>
      tpu.vector_store %arg10[%c0_21, %c0_22], %28 {strides = array<i32>} : memref<16x128xf32, #tpu.memory_space<vmem>>, vector<16x128xf32>,
      %31 = arith.subf %22, %28 : vector<16x128xf32>
      %c0_23 = arith.constant 0 : index
      %c0_24 = arith.constant 0 : index
      %32 = vector.load %arg11[%c0_23, %c0_24] : memref<16x128xf32, #tpu.memory_space<vmem>>, vector<16x128xf32>
      tpu.vector_store %arg11[%c0_23, %c0_24], %31 {strides = array<i32>} : memref<16x128xf32, #tpu.memory_space<vmem>>, vector<16x128xf32>,
      %33 = vector.broadcast %16 : vector<16x1xf32> to vector<16x128xf32>
      %34 = arith.mulf %33, %21 : vector<16x128xf32>
      %c0_25 = arith.constant 0 : index
      %c0_26 = arith.constant 0 : index
      %35 = vector.load %arg8[%c0_25, %c0_26] : memref<16x256xf32, #tpu.memory_space<vmem>>, vector<16x128xf32>
      tpu.vector_store %arg8[%c0_25, %c0_26], %34 {strides = array<i32>} : memref<16x256xf32, #tpu.memory_space<vmem>>, vector<16x128xf32>,
      %c0_27 = arith.constant 0 : index
      %c0_28 = arith.constant 0 : index
      %36 = vector.load %arg7[%c0_27, %c0_28] : memref<16x1xf32, #tpu.memory_space<vmem>>, vector<16x1xf32>
      %37 = vector.broadcast %36 : vector<16x1xf32> to vector<16x128xf32>
      %38 = arith.mulf %37, %28 : vector<16x128xf32>
      %c0_29 = arith.constant 0 : index
      %c128 = arith.constant 128 : index
      %39 = vector.load %arg8[%c0_29, %c128] : memref<16x256xf32, #tpu.memory_space<vmem>>, vector<16x128xf32>
      tpu.vector_store %arg8[%c0_29, %c128], %38 {strides = array<i32>} : memref<16x256xf32, #tpu.memory_space<vmem>>, vector<16x128xf32>,
    } else {
    }
    return
  }
  func.func @transform_0(%arg0: i32, %arg1: i32) -> (i32, i32) {
    %c0_i32 = arith.constant 0 : i32
    return %arg0, %arg1 : i32, i32
  }
  func.func @transform_1(%arg0: i32, %arg1: i32) -> (i32, i32) {
    %c0_i32 = arith.constant 0 : i32
    %c0_i32_0 = arith.constant 0 : i32
    %c0_i32_1 = arith.constant 0 : i32
    return %c0_i32, %c0_i32_0 : i32, i32
  }
  func.func @transform_2(%arg0: i32, %arg1: i32) -> (i32, i32) {
    %c0_i32 = arith.constant 0 : i32
    %c0_i32_0 = arith.constant 0 : i32
    return %arg0, %c0_i32 : i32, i32
  }
  func.func @transform_3(%arg0: i32, %arg1: i32) -> (i32, i32) {
    %c0_i32 = arith.constant 0 : i32
    %c0_i32_0 = arith.constant 0 : i32
    return %arg0, %c0_i32 : i32, i32
  }
  func.func @transform_4(%arg0: i32, %arg1: i32) -> (i32, i32) {
    %c0_i32 = arith.constant 0 : i32
    %c0_i32_0 = arith.constant 0 : i32
    return %arg0, %c0_i32 : i32, i32
  }
  func.func @transform_5(%arg0: i32, %arg1: i32) -> (i32, i32) {
    %c0_i32 = arith.constant 0 : i32
    %c0_i32_0 = arith.constant 0 : i32
    return %arg0, %c0_i32 : i32, i32
  }
  func.func @transform_6(%arg0: i32, %arg1: i32) -> (i32, i32) {
    %c0_i32 = arith.constant 0 : i32
    %c0_i32_0 = arith.constant 0 : i32
    return %arg0, %c0_i32 : i32, i32
  }
  func.func @transform_7(%arg0: i32, %arg1: i32) -> (i32, i32) {
    %c0_i32 = arith.constant 0 : i32
    %c0_i32_0 = arith.constant 0 : i32
    return %arg0, %c0_i32 : i32, i32
  }
  func.func @transform_8(%arg0: i32, %arg1: i32) -> (i32, i32) {
    %c0_i32 = arith.constant 0 : i32
    %c0_i32_0 = arith.constant 0 : i32
    return %arg0, %c0_i32 : i32, i32
  }
  func.func @transform_9(%arg0: i32, %arg1: i32) -> (i32, i32) {
    %c0_i32 = arith.constant 0 : i32
    %c0_i32_0 = arith.constant 0 : i32
    return %arg0, %c0_i32 : i32, i32
  }
}

</mosaic_0001>

<bundles_post_ra>
// kernel: sct_conv.5
= control target key start
LH: loop header
LB: loop body
LE: loop exit
PB: predicated region body
PF: predicated region fallthrough
CT: control target
= control target key end

     0   :  { %vm91_vm0 = vcmask 130048   ;;  %s437_s0 = inlined_call_operand.vmem [shape: f32[16,16], index: 0, kind: input, shape index: {}]   ;;  %s438_s1 = inlined_call_operand.vmem [shape: f32[16,256], index: 1, kind: input, shape index: {}, may-alias: {1,2}]   ;;  %s439_s2 = inlined_call_operand.vmem [shape: f32[16,256], index: 2, kind: input, shape index: {}, may-alias: {1,2}]   ;;  %s440_s3 = inlined_call_operand.vmem [shape: f32[16,128], index: 3, kind: input, shape index: {}]   ;;  %s441_s4 = inlined_call_operand.vmem [shape: f32[16,1], index: 4, kind: input, shape index: {}]   ;;  %s442_s5 = inlined_call_operand.vmem [shape: f32[16,1], index: 5, kind: input, shape index: {}]   ;;  %s443_s6 = inlined_call_operand.vmem [shape: f32[16,256], index: 6, kind: output, shape index: {0}]   ;;  %s444_s7 = inlined_call_operand.vmem [shape: f32[16,128], index: 7, kind: output, shape index: {1}]   ;;  %s445_s8 = inlined_call_operand.vmem [shape: f32[16,128], index: 8, kind: output, shape index: {2}]   ;;  %s446_s9 = inlined_call_operand.hbm [shape: f32[16,128], index: 9, kind: output, shape index: {3}]  }
   0x1   :  { %v90_v0 = vld [vmem:[%s438_s1 + $0x18] sm:$0xff]  ;;  %v89_v1 = vld [vmem:[%s438_s1 + $0x10] sm:$0xff]  ;;  %v88_v2 = vld [vmem:[%s438_s1 + $0x8] sm:$0xff] }
   0x2   :  { %126 = vmatprep.subr.mxu0 %v90_v0  ;;  %280 = vmatprep.subr.mxu1 %v90_v0  ;;  %v87_v3 = vld [vmem:[%s438_s1] sm:$0xff]  ;;  %v81_v5 = vld [vmem:[%s437_s0 + $0x8] sm:$0xff] }
   0x3   :  { %127 = vmatpush1.msra.mxu0 %v89_v1  ;;  %282 = vmatpush1.msra.mxu1 %v89_v1  ;;  %v80_v4 = vld [vmem:[%s437_s0] sm:$0xff] }
   0x4   :  { %128 = vmatprep.subr.mxu0 %v88_v2  ;;  %281 = vmatprep.subr.mxu1 %v88_v2 }
   0x5   :  { %15 = vsyncpa [#allocation5], 0  ;;  %129 = vmatpush1.msra.mxu0 %v87_v3  ;;  %283 = vmatpush1.msra.mxu1 %v87_v3  ;;  %v313_v6 = vmov 0.0   ;;  %v190_v7 = vld [vmem:[%s441_s4] sm:$0xff]  ;;  %v314_v9 = vmov 0   ;;  %v191_v10 = vld [vmem:[%s441_s4 + $0x8] sm:$0xff] }
   0x6   :  { %162 = vmatprep.mubr.f32.mxu0 %v313_v6  ;;  %168 = vmatprep.mubr.f32.mxu1 %v313_v6  ;;  %v228_v8 = vld [vmem:[%s442_s5] sm:$0xff]  ;;  %v229_v11 = vld [vmem:[%s442_s5 + $0x8] sm:$0xff]  ;;  %v54_v14 = vld [vmem:[%s439_s2 + $0x10] sm:$0xff] }
   0x7   :  { %278 = vmatmul.mubr.msk.f32.vlgmr.msra.gmra.mxu0 %vm91_vm0, %v80_v4  ;;  %279 = vmatmul.mubr.msk.f32.vlgmr.msra.gmra.mxu1 %vm91_vm0, %v81_v5  ;;  %v52_v13 = vld [vmem:[%s439_s2] sm:$0xff]  ;;  %v209_v16 = vld [vmem:[%s440_s3 + $0x8] sm:$0xff]  ;;  %s315_s2 = smov [#allocation4]  }
   0x8   :  { %289 = vset.pattern.permute.xlu0 %v314_v9  ;;  %290 = vset.pattern.permute.xlu1 %v314_v9  ;;  %v208_v15 = vld [vmem:[%s440_s3] sm:$0xff]  ;;  %v211_v24 = vmul.f32 0.5, %v209_v16  ;;  %s255_s5 = sshll.u32 %s315_s2, 4  ;;  %s256_s5 = int_to_ptr.vmem [resolvable:$true] %s255_s5 }
   0x9   :  { %198 = vperm.xlu0 %289, %v190_v7   ;;  %232 = vperm.xlu1 %290, %v228_v8   ;;  %v210_v23 = vmul.f32 0.5, %v208_v15  ;;  %s291_s25 = scalar_lea.vmem %s256_s5, 256  ;;  %p296_p1 = scmp.lt.s32.totalorder %s256_s5, %s256_s5 }
   0xa   :  { %p292_p0 = scmp.ne.s32.totalorder %s256_s5, %s291_s25  ;;  %p297_p2 = scmp.lt.s32.totalorder %s291_s25, %s291_s25 }
   0xc   :  { %p298_p3 = por %p297_p2, %p296_p1 }
   0xd   :  { %203 = vperm.xlu0 %289, %v191_v10   ;;  %237 = vperm.xlu1 %290, %v229_v11  }
   0xe   :  { %p299_p4 = pnand %p298_p3, %p292_p0 }
  0x84   :  { %v199_v12 = vpop.permute.xlu0 %198  ;;  %v233_v17 = vpop.permute.xlu1 %232 }
  0x88   :  { %v204_v18 = vpop.permute.xlu0 %203  ;;  %v238_v35 = vpop.permute.xlu1 %237 }
  0xc7   :  { %v164_v19 = vpop.f32.mrf.mxu0  ;;  %v170_v20 = vpop.f32.mrf.mxu1 }
  0xc8   :  { %v194_v21 = vadd.f32 %v164_v19, %v52_v13  ;;  %v195_v22 = vadd.f32 %v170_v20, %v54_v14 }
  0xc9   :  { %v166_v25 = vpop.f32.mrf.mxu0  ;;  %v172_v26 = vpop.f32.mrf.mxu1 }
  0xca   :  { %v206_v27 = vmul.f32 %v199_v12, %v194_v21  ;;  %v207_v28 = vmul.f32 %v204_v18, %v195_v22  ;;  %v212_v29 = vmul.f32 0.5, %v166_v25  ;;  %v213_v30 = vmul.f32 0.5, %v172_v26 }
  0xcc   :  { %216 = vst [vmem:[%s444_s7] sm:$0xff] %v206_v27  ;;  %v224_v31 = vmul.f32 %v206_v27, %v199_v12  ;;  %217 = vst [vmem:[%s444_s7 + $0x8] sm:$0xff] %v207_v28  ;;  %v225_v32 = vmul.f32 %v207_v28, %v204_v18  ;;  %v214_v33 = vadd.f32 %v212_v29, %v210_v23 }
  0xcd   :  { %v215_v34 = vadd.f32 %v213_v30, %v211_v24 }
  0xce   :  { %226 = vst [vmem:[%s443_s6] sm:$0xff] %v224_v31  ;;  %227 = vst [vmem:[%s443_s6 + $0x10] sm:$0xff] %v225_v32  ;;  %v220_v36 = vsub.f32 %v208_v15, %v214_v33  ;;  %v240_v37 = vmul.f32 %v233_v17, %v214_v33 }
  0xcf   :  { %218 = vst [vmem:[%s445_s8] sm:$0xff] %v214_v33  ;;  %219 = vst [vmem:[%s445_s8 + $0x8] sm:$0xff] %v215_v34  ;;  %v221_v38 = vsub.f32 %v209_v16, %v215_v34  ;;  %v241_v39 = vmul.f32 %v238_v35, %v215_v34 }
  0xd0   :  { %222 = vst [vmem:[#allocation4] sm:$0xff] %v220_v36  ;;  %242 = vst [vmem:[%s443_s6 + $0x8] sm:$0xff] %v240_v37 }
  0xd1   :  { %223 = vst [vmem:[#allocation4 + $0x8] sm:$0xff] %v221_v38  ;;  %243 = vst [vmem:[%s443_s6 + $0x18] sm:$0xff] %v241_v39 }
  0xd2   :  { %302 = shalt.err (!%p299_p4)
}
  0xd3   :  { %s316_s8 = smov 128   ;;  %s317_s26 = smov 8  }
  0xd4   :  { %261 = dma.vmem_to_hbm [thread:$0]  %s256_s5, 256, %s446_s9, [#allocation5], %s316_s8, %s316_s8, %s317_s26  }
  0xd5   :  { %311 = dma.done.wait [#allocation5], 256  }
  0xd6   :  { %312 = vsyncadd [#allocation5], 4294967040 }
  0xd7   :  { %271 = vsyncpa [#allocation5], 1 }

// kernel: sct_conv.8
= control target key start
LH: loop header
LB: loop body
LE: loop exit
PB: predicated region body
PF: predicated region fallthrough
CT: control target
= control target key end

     0   :  { %15 = vsyncpa [#allocation5], 0  ;;  %vm92_vm0 = vcmask 130048   ;;  %s520_s0 = inlined_call_operand.vmem [shape: f32[16,16], index: 0, kind: input, shape index: {}]   ;;  %s521_s1 = inlined_call_operand.vmem [shape: f32[16,256], index: 1, kind: input, shape index: {}, may-alias: {1,2}]   ;;  %s522_s2 = inlined_call_operand.vmem [shape: f32[16,256], index: 2, kind: input, shape index: {}, may-alias: {1,2}]   ;;  %s523_s3 = inlined_call_operand.vmem [shape: f32[16,128], index: 3, kind: input, shape index: {}]   ;;  %s524_s4 = inlined_call_operand.vmem [shape: f32[16,1], index: 4, kind: input, shape index: {}]   ;;  %s525_s5 = inlined_call_operand.vmem [shape: f32[16,1], index: 5, kind: input, shape index: {}]   ;;  %s526_s6 = inlined_call_operand.hbm [shape: f32[16,256], index: 6, kind: output, shape index: {0}]   ;;  %s527_s7 = inlined_call_operand.hbm [shape: f32[16,128], index: 7, kind: output, shape index: {1}]   ;;  %s528_s8 = inlined_call_operand.hbm [shape: f32[16,128], index: 8, kind: output, shape index: {2}]   ;;  %s529_s9 = inlined_call_operand.vmem [shape: f32[16,128], index: 9, kind: output, shape index: {3}]  }
   0x1   :  { %v91_v0 = vld [vmem:[%s521_s1 + $0x18] sm:$0xff]  ;;  %v90_v1 = vld [vmem:[%s521_s1 + $0x10] sm:$0xff]  ;;  %v89_v2 = vld [vmem:[%s521_s1 + $0x8] sm:$0xff] }
   0x2   :  { %127 = vmatprep.subr.mxu0 %v91_v0  ;;  %304 = vmatprep.subr.mxu1 %v91_v0  ;;  %v88_v3 = vld [vmem:[%s521_s1] sm:$0xff]  ;;  %v82_v5 = vld [vmem:[%s520_s0 + $0x8] sm:$0xff] }
   0x3   :  { %128 = vmatpush1.msra.mxu0 %v90_v1  ;;  %306 = vmatpush1.msra.mxu1 %v90_v1  ;;  %v81_v4 = vld [vmem:[%s520_s0] sm:$0xff] }
   0x4   :  { %129 = vmatprep.subr.mxu0 %v89_v2  ;;  %305 = vmatprep.subr.mxu1 %v89_v2 }
   0x5   :  { %16 = vsyncpa [#allocation7], 0  ;;  %130 = vmatpush1.msra.mxu0 %v88_v3  ;;  %307 = vmatpush1.msra.mxu1 %v88_v3  ;;  %v383_v6 = vmov 0.0   ;;  %v191_v7 = vld [vmem:[%s524_s4] sm:$0xff]  ;;  %v384_v9 = vmov 0   ;;  %v192_v10 = vld [vmem:[%s524_s4 + $0x8] sm:$0xff] }
   0x6   :  { %163 = vmatprep.mubr.f32.mxu0 %v383_v6  ;;  %169 = vmatprep.mubr.f32.mxu1 %v383_v6  ;;  %v229_v8 = vld [vmem:[%s525_s5] sm:$0xff]  ;;  %v230_v11 = vld [vmem:[%s525_s5 + $0x8] sm:$0xff]  ;;  %v55_v14 = vld [vmem:[%s522_s2 + $0x10] sm:$0xff]  ;;  %s385_s5 = smov [#allocation6]   ;;  %s387_s15 = smov [#allocation8]  }
   0x7   :  { %302 = vmatmul.mubr.msk.f32.vlgmr.msra.gmra.mxu0 %vm92_vm0, %v81_v4  ;;  %303 = vmatmul.mubr.msk.f32.vlgmr.msra.gmra.mxu1 %vm92_vm0, %v82_v5  ;;  %v53_v13 = vld [vmem:[%s522_s2] sm:$0xff]  ;;  %v210_v16 = vld [vmem:[%s523_s3 + $0x8] sm:$0xff]  ;;  %s262_s13 = sshll.u32 %s385_s5, 4  ;;  %s386_s2 = smov [#allocation4]   ;;  %s484_s13 = int_to_ptr.vmem [resolvable:$true] %s262_s13 }
   0x8   :  { %317 = vset.pattern.permute.xlu0 %v384_v9  ;;  %318 = vset.pattern.permute.xlu1 %v384_v9  ;;  %v209_v15 = vld [vmem:[%s523_s3] sm:$0xff]  ;;  %v212_v24 = vmul.f32 0.5, %v210_v16  ;;  %s250_s14 = sshll.u32 %s386_s2, 4  ;;  %s274_s3 = sshll.u32 %s387_s15, 4  ;;  %s486_s14 = int_to_ptr.vmem [resolvable:$true] %s250_s14  ;;  %s488_s3 = int_to_ptr.vmem [resolvable:$true] %s274_s3 }
   0x9   :  { %199 = vperm.xlu0 %317, %v191_v7   ;;  %233 = vperm.xlu1 %318, %v229_v8   ;;  %v211_v23 = vmul.f32 0.5, %v209_v15  ;;  %s319_s16 = scalar_lea.vmem %s484_s13, 256  ;;  %p324_p1 = scmp.lt.s32.totalorder %s484_s13, %s484_s13 }
   0xa   :  { %p320_p0 = scmp.ne.s32.totalorder %s484_s13, %s319_s16  ;;  %p325_p2 = scmp.lt.s32.totalorder %s319_s16, %s319_s16 }
   0xc   :  { %p326_p3 = por %p325_p2, %p324_p1 }
   0xd   :  { %204 = vperm.xlu0 %317, %v192_v10   ;;  %238 = vperm.xlu1 %318, %v230_v11  }
   0xe   :  { %p327_p4 = pnand %p326_p3, %p320_p0 }
  0x84   :  { %v200_v12 = vpop.permute.xlu0 %199  ;;  %v234_v17 = vpop.permute.xlu1 %233 }
  0x88   :  { %v205_v20 = vpop.permute.xlu0 %204  ;;  %v239_v35 = vpop.permute.xlu1 %238 }
  0xc7   :  { %v165_v18 = vpop.f32.mrf.mxu0  ;;  %v171_v19 = vpop.f32.mrf.mxu1 }
  0xc8   :  { %v195_v21 = vadd.f32 %v165_v18, %v53_v13  ;;  %v196_v22 = vadd.f32 %v171_v19, %v55_v14 }
  0xc9   :  { %v167_v25 = vpop.f32.mrf.mxu0  ;;  %v173_v26 = vpop.f32.mrf.mxu1 }
  0xca   :  { %v207_v27 = vmul.f32 %v200_v12, %v195_v21  ;;  %v208_v28 = vmul.f32 %v205_v20, %v196_v22  ;;  %v213_v29 = vmul.f32 0.5, %v167_v25  ;;  %v214_v30 = vmul.f32 0.5, %v173_v26 }
  0xcc   :  { %217 = vst [vmem:[#allocation6] sm:$0xff] %v207_v27  ;;  %v225_v31 = vmul.f32 %v207_v27, %v200_v12  ;;  %218 = vst [vmem:[#allocation6 + $0x8] sm:$0xff] %v208_v28  ;;  %v226_v32 = vmul.f32 %v208_v28, %v205_v20  ;;  %v215_v33 = vadd.f32 %v213_v29, %v211_v23 }
  0xcd   :  { %v216_v34 = vadd.f32 %v214_v30, %v212_v24 }
  0xce   :  { %330 = shalt.err (!%p327_p4)
}
  0xcf   :  { %s388_s17 = smov 128   ;;  %s389_s18 = smov 8   ;;  %227 = vst [vmem:[#allocation4] sm:$0xff] %v225_v31  ;;  %228 = vst [vmem:[#allocation4 + $0x10] sm:$0xff] %v226_v32  ;;  %v221_v36 = vsub.f32 %v209_v15, %v215_v33  ;;  %v241_v37 = vmul.f32 %v234_v17, %v215_v33  ;;  %v222_v38 = vsub.f32 %v210_v16, %v216_v34 }
  0xd0   :  { %268 = dma.vmem_to_hbm [thread:$0]  %s484_s13, 256, %s527_s7, [#allocation7], %s388_s17, %s388_s17, %s389_s18   ;;  %219 = vst [vmem:[#allocation8] sm:$0xff] %v215_v33  ;;  %220 = vst [vmem:[#allocation8 + $0x8] sm:$0xff] %v216_v34  ;;  %v242_v39 = vmul.f32 %v239_v35, %v216_v34 }
  0xd1   :  { %s339_s1 = scalar_lea.vmem %s488_s3, 256  ;;  %p344_p6 = scmp.lt.s32.totalorder %s488_s3, %s488_s3 }
  0xd2   :  { %p340_p5 = scmp.ne.s32.totalorder %s488_s3, %s339_s1  ;;  %p345_p7 = scmp.lt.s32.totalorder %s339_s1, %s339_s1 }
  0xd4   :  { %p346_p8 = por %p345_p7, %p344_p6 }
  0xd6   :  { %p347_p9 = pnand %p346_p8, %p340_p5 }
  0xd8   :  { %350 = shalt.err (!%p347_p9)
}
  0xd9   :  { %280 = dma.vmem_to_hbm [thread:$0]  %s488_s3, 256, %s528_s8, [#allocation7], %s388_s17, %s388_s17, %s389_s18   ;;  %243 = vst [vmem:[#allocation4 + $0x8] sm:$0xff] %v241_v37  ;;  %244 = vst [vmem:[#allocation4 + $0x18] sm:$0xff] %v242_v39 }
  0xda   :  { %223 = vst [vmem:[%s529_s9] sm:$0xff] %v221_v36  ;;  %224 = vst [vmem:[%s529_s9 + $0x8] sm:$0xff] %v222_v38  ;;  %s359_s25 = scalar_lea.vmem %s486_s14, 512  ;;  %p364_p11 = scmp.lt.s32.totalorder %s486_s14, %s486_s14 }
  0xdb   :  { %p360_p10 = scmp.ne.s32.totalorder %s486_s14, %s359_s25  ;;  %p365_p12 = scmp.lt.s32.totalorder %s359_s25, %s359_s25 }
  0xdd   :  { %p366_p13 = por %p365_p12, %p364_p11 }
  0xdf   :  { %p367_p0 = pnand %p366_p13, %p360_p10 }
  0xe1   :  { %370 = shalt.err (!%p367_p0)
}
  0xe2   :  { %s390_s26 = smov 256   ;;  %s391_s8 = smov 16  }
  0xe3   :  { %256 = dma.vmem_to_hbm [thread:$0]  %s486_s14, 512, %s526_s6, [#allocation5], %s390_s26, %s390_s26, %s391_s8  }
  0xe4   :  { %379 = dma.done.wait [#allocation5], 512  }
  0xe5   :  { %380 = vsyncadd [#allocation5], 4294966784 }
  0xe6   :  { %381 = dma.done.wait [#allocation7], 512  }
  0xe7   :  { %382 = vsyncadd [#allocation7], 4294966784 }
  0xe8   :  { %294 = vsyncpa [#allocation5], 1 }
  0xe9   :  { %295 = vsyncpa [#allocation7], 1 }

// kernel: sct_conv.6
= control target key start
LH: loop header
LB: loop body
LE: loop exit
PB: predicated region body
PF: predicated region fallthrough
CT: control target
= control target key end

     0   :  { %vm90_vm0 = vcmask 130048   ;;  %v275_v6 = vmov 0.0   ;;  %v276_v9 = vmov 0   ;;  %s399_s0 = inlined_call_operand.vmem [shape: f32[16,16], index: 0, kind: input, shape index: {}]   ;;  %s400_s1 = inlined_call_operand.vmem [shape: f32[16,256], index: 1, kind: input, shape index: {}, may-alias: {1,2}]   ;;  %s401_s2 = inlined_call_operand.vmem [shape: f32[16,256], index: 2, kind: input, shape index: {}, may-alias: {1,2}]   ;;  %s402_s3 = inlined_call_operand.vmem [shape: f32[16,128], index: 3, kind: input, shape index: {}]   ;;  %s403_s4 = inlined_call_operand.vmem [shape: f32[16,1], index: 4, kind: input, shape index: {}]   ;;  %s404_s5 = inlined_call_operand.vmem [shape: f32[16,1], index: 5, kind: input, shape index: {}]   ;;  %s405_s6 = inlined_call_operand.vmem [shape: f32[16,256], index: 6, kind: output, shape index: {0}]   ;;  %s406_s7 = inlined_call_operand.vmem [shape: f32[16,128], index: 7, kind: output, shape index: {1}]   ;;  %s407_s8 = inlined_call_operand.vmem [shape: f32[16,128], index: 8, kind: output, shape index: {2}]   ;;  %s408_s9 = inlined_call_operand.vmem [shape: f32[16,128], index: 9, kind: output, shape index: {3}]  }
   0x1   :  { %v89_v0 = vld [vmem:[%s400_s1 + $0x18] sm:$0xff]  ;;  %v88_v1 = vld [vmem:[%s400_s1 + $0x10] sm:$0xff]  ;;  %v87_v2 = vld [vmem:[%s400_s1 + $0x8] sm:$0xff]  ;;  %161 = vmatprep.mubr.f32.mxu0 %v275_v6  ;;  %167 = vmatprep.mubr.f32.mxu1 %v275_v6 }
   0x2   :  { %125 = vmatprep.subr.mxu0 %v89_v0  ;;  %267 = vmatprep.subr.mxu1 %v89_v0  ;;  %v86_v3 = vld [vmem:[%s400_s1] sm:$0xff]  ;;  %v80_v5 = vld [vmem:[%s399_s0 + $0x8] sm:$0xff]  ;;  %v53_v14 = vld [vmem:[%s401_s2 + $0x10] sm:$0xff] }
   0x3   :  { %126 = vmatpush1.msra.mxu0 %v88_v1  ;;  %269 = vmatpush1.msra.mxu1 %v88_v1  ;;  %v79_v4 = vld [vmem:[%s399_s0] sm:$0xff]  ;;  %v190_v10 = vld [vmem:[%s403_s4 + $0x8] sm:$0xff] }
   0x4   :  { %127 = vmatprep.subr.mxu0 %v87_v2  ;;  %268 = vmatprep.subr.mxu1 %v87_v2  ;;  %v189_v7 = vld [vmem:[%s403_s4] sm:$0xff]  ;;  %v228_v11 = vld [vmem:[%s404_s5 + $0x8] sm:$0xff] }
   0x5   :  { %128 = vmatpush1.msra.mxu0 %v86_v3  ;;  %270 = vmatpush1.msra.mxu1 %v86_v3  ;;  %v227_v8 = vld [vmem:[%s404_s5] sm:$0xff]  ;;  %v208_v16 = vld [vmem:[%s402_s3 + $0x8] sm:$0xff] }
   0x6   :  { %265 = vmatmul.mubr.msk.f32.vlgmr.msra.gmra.mxu0 %vm90_vm0, %v79_v4  ;;  %266 = vmatmul.mubr.msk.f32.vlgmr.msra.gmra.mxu1 %vm90_vm0, %v80_v5  ;;  %v51_v13 = vld [vmem:[%s401_s2] sm:$0xff]  ;;  %v210_v24 = vmul.f32 0.5, %v208_v16 }
   0x7   :  { %273 = vset.pattern.permute.xlu0 %v276_v9  ;;  %274 = vset.pattern.permute.xlu1 %v276_v9  ;;  %v207_v15 = vld [vmem:[%s402_s3] sm:$0xff] }
   0x8   :  { %197 = vperm.xlu0 %273, %v189_v7   ;;  %231 = vperm.xlu1 %274, %v227_v8   ;;  %v209_v23 = vmul.f32 0.5, %v207_v15 }
   0xc   :  { %202 = vperm.xlu0 %273, %v190_v10   ;;  %236 = vperm.xlu1 %274, %v228_v11  }
  0x83   :  { %v198_v12 = vpop.permute.xlu0 %197  ;;  %v232_v17 = vpop.permute.xlu1 %231 }
  0x87   :  { %v203_v20 = vpop.permute.xlu0 %202  ;;  %v237_v35 = vpop.permute.xlu1 %236 }
  0xc6   :  { %v163_v18 = vpop.f32.mrf.mxu0  ;;  %v169_v19 = vpop.f32.mrf.mxu1 }
  0xc7   :  { %v193_v21 = vadd.f32 %v163_v18, %v51_v13  ;;  %v194_v22 = vadd.f32 %v169_v19, %v53_v14 }
  0xc8   :  { %v165_v25 = vpop.f32.mrf.mxu0  ;;  %v171_v26 = vpop.f32.mrf.mxu1 }
  0xc9   :  { %v205_v27 = vmul.f32 %v198_v12, %v193_v21  ;;  %v206_v28 = vmul.f32 %v203_v20, %v194_v22  ;;  %v211_v29 = vmul.f32 0.5, %v165_v25  ;;  %v212_v30 = vmul.f32 0.5, %v171_v26 }
  0xcb   :  { %215 = vst [vmem:[%s406_s7] sm:$0xff] %v205_v27  ;;  %v223_v31 = vmul.f32 %v205_v27, %v198_v12  ;;  %216 = vst [vmem:[%s406_s7 + $0x8] sm:$0xff] %v206_v28  ;;  %v224_v32 = vmul.f32 %v206_v28, %v203_v20  ;;  %v213_v33 = vadd.f32 %v211_v29, %v209_v23 }
  0xcc   :  { %v214_v34 = vadd.f32 %v212_v30, %v210_v24 }
  0xcd   :  { %225 = vst [vmem:[%s405_s6] sm:$0xff] %v223_v31  ;;  %226 = vst [vmem:[%s405_s6 + $0x10] sm:$0xff] %v224_v32  ;;  %v219_v36 = vsub.f32 %v207_v15, %v213_v33  ;;  %v239_v37 = vmul.f32 %v232_v17, %v213_v33 }
  0xce   :  { %217 = vst [vmem:[%s407_s8] sm:$0xff] %v213_v33  ;;  %218 = vst [vmem:[%s407_s8 + $0x8] sm:$0xff] %v214_v34  ;;  %v220_v38 = vsub.f32 %v208_v16, %v214_v34  ;;  %v240_v39 = vmul.f32 %v237_v35, %v214_v34 }
  0xcf   :  { %221 = vst [vmem:[%s408_s9] sm:$0xff] %v219_v36  ;;  %241 = vst [vmem:[%s405_s6 + $0x8] sm:$0xff] %v239_v37 }
  0xd0   :  { %222 = vst [vmem:[%s408_s9 + $0x8] sm:$0xff] %v220_v38  ;;  %242 = vst [vmem:[%s405_s6 + $0x18] sm:$0xff] %v240_v39 }

// kernel: sct_conv.9
= control target key start
LH: loop header
LB: loop body
LE: loop exit
PB: predicated region body
PF: predicated region fallthrough
CT: control target
= control target key end

     0   :  { %s945_s0 = inlined_call_operand.vmem [shape: f32[16,128], index: 0, kind: input, shape index: {}]   ;;  %s946_s1 = inlined_call_operand.vmem [shape: f32[16,128], index: 1, kind: input, shape index: {}]   ;;  %s947_s2 = inlined_call_operand.vmem [shape: f32[16,128], index: 2, kind: input, shape index: {}]   ;;  %s948_s3 = inlined_call_operand.vmem [shape: f32[16,128], index: 3, kind: input, shape index: {}]   ;;  %s949_s4 = inlined_call_operand.vmem [shape: f32[16,128], index: 4, kind: input, shape index: {}]   ;;  %s950_s5 = inlined_call_operand.vmem [shape: f32[16,128], index: 5, kind: input, shape index: {}]   ;;  %s951_s6 = inlined_call_operand.vmem [shape: f32[16,128], index: 6, kind: input, shape index: {}]   ;;  %s952_s7 = inlined_call_operand.vmem [shape: f32[1,128], index: 7, kind: input, shape index: {}]   ;;  %s953_s8 = inlined_call_operand.vmem [shape: f32[1,128], index: 8, kind: input, shape index: {}]   ;;  %s954_s9 = inlined_call_operand.vmem [shape: f32[128,128], index: 9, kind: input, shape index: {}]   ;;  %s955_s10 = inlined_call_operand.vmem [shape: f32[1,128], index: 10, kind: input, shape index: {}]   ;;  %s956_s11 = inlined_call_operand.vmem [shape: f32[128,128], index: 11, kind: input, shape index: {}]   ;;  %s957_s12 = inlined_call_operand.vmem [shape: f32[1,128], index: 12, kind: input, shape index: {}]   ;;  %s958_s13 = inlined_call_operand.hbm [shape: f32[16,128], index: 13, kind: output, shape index: {}]  }
   0x1   :  { %v46_v0 = vld [vmem:[%s945_s0 + $0x8] sm:$0xff]  ;;  %v475_v1 = vld [vmem:[%s952_s7] ss:$0 sm:$0xff] }
   0x2   :  { %v45_v2 = vld [vmem:[%s945_s0] sm:$0xff]  ;;  %v86_v3 = vmax.f32 %v46_v0, 0.0  ;;  %v56_v11 = vld [vmem:[%s947_s2 + $0x8] sm:$0xff] }
   0x3   :  { %v85_v4 = vmax.f32 %v45_v2, 0.0  ;;  %v55_v5 = vld [vmem:[%s947_s2] sm:$0xff]  ;;  %v48_v12 = vld [vmem:[%s946_s1 + $0x8] sm:$0xff]  ;;  %vm58_vm2 = vcmp.gt.f32.partialorder %v56_v11, 0.0  ;;  %v60_v17 = vmul.f32 0.01, %v56_v11 }
   0x4   :  { %v47_v6 = vld [vmem:[%s946_s1] sm:$0xff]  ;;  %vm57_vm0 = vcmp.gt.f32.partialorder %v55_v5, 0.0  ;;  %v59_v7 = vmul.f32 0.01, %v55_v5  ;;  %v94_v9 = vmul.f32 %v475_v1, %v86_v3  ;;  %v64_v13 = vld [vmem:[%s948_s3 + $0x8] sm:$0xff]  ;;  %vm50_vm3 = vcmp.gt.f32.partialorder %v48_v12, 0.0 }
   0x5   :  { %vm49_vm1 = vcmp.gt.f32.partialorder %v47_v6, 0.0  ;;  %v51_v8 = vmul.f32 0.01, %v47_v6  ;;  %v93_v10 = vmul.f32 %v475_v1, %v85_v4  ;;  %v740_v15 = vld [vmem:[%s953_s8] ss:$0 sm:$0xff]  ;;  %v752_v22 = vld [vmem:[%s949_s4 + $0x8] sm:$0xff]  ;;  %v754_v23 = vsel %vm58_vm2, %v56_v11, %v60_v17 }
   0x6   :  { %v735_v14 = vsel %vm57_vm0, %v55_v5, %v59_v7  ;;  %v63_v18 = vld [vmem:[%s948_s3] sm:$0xff]  ;;  %97 = vadd.xlane.f32.xlu1 %v94_v9  ;;  %v52_v21 = vmul.f32 0.01, %v48_v12  ;;  %vm66_vm4 = vcmp.gt.f32.partialorder %v64_v13, 0.0  ;;  %v68_v24 = vmul.f32 0.01, %v64_v13 }
   0x7   :  { %v742_v16 = vsel %vm49_vm1, %v47_v6, %v51_v8  ;;  %95 = vadd.xlane.f32.xlu0 %v93_v10  ;;  %v115_v19 = vmax.f32 %v735_v14, 0.0  ;;  %vm65_vm5 = vcmp.gt.f32.partialorder %v63_v18, 0.0  ;;  %v759_v25 = vld [vmem:[%s949_s4] sm:$0xff]  ;;  %v116_v28 = vmax.f32 %v754_v23, 0.0 }
   0x8   :  { %v99_v20 = vmax.f32 %v742_v16, 0.0  ;;  %v764_v29 = vsel %vm50_vm3, %v48_v12, %v52_v21 }
   0x9   :  { %v117_v26 = vmul.f32 %v740_v15, %v115_v19 }
   0xa   :  { %v107_v27 = vmul.f32 %v740_v15, %v99_v20 }
   0xb   :  { %18 = vsyncpa [#allocation3], 0  ;;  %v100_v30 = vmax.f32 %v764_v29, 0.0  ;;  %v767_v31 = vsel %vm66_vm4, %v64_v13, %v68_v24  ;;  %v67_v32 = vmul.f32 0.01, %v63_v18  ;;  %119 = vadd.xlane.f32.xlu1 %v117_v26  ;;  %v118_v34 = vmul.f32 %v740_v15, %v116_v28  ;;  %v776_v37 = vld [vmem:[%s950_s5 + $0x8] sm:$0xff] }
   0xc   :  { %v74_v33 = vand.u32 2147483647, %v752_v22  ;;  %109 = vadd.xlane.f32.xlu0 %v107_v27  ;;  %v126_v35 = vmax.f32 %v767_v31, 0.0  ;;  %v73_v36 = vand.u32 2147483647, %v759_v25  ;;  %v785_v40 = vld [vmem:[%s950_s5] sm:$0xff] }
   0xd   :  { %v108_v38 = vmul.f32 %v740_v15, %v100_v30  ;;  %v780_v39 = vsel %vm65_vm5, %v63_v18, %v67_v32  ;;  %v78_v43 = vand.u32 2147483647, %v776_v37  ;;  %v77_v47 = vand.u32 2147483647, %v785_v40  ;;  %v799_v48 = vld [vmem:[%s951_s6 + $0x8] sm:$0xff]  ;;  %v804_v49 = vld [vmem:[%s951_s6] sm:$0xff] }
   0xe   :  { %v125_v41 = vmax.f32 %v780_v39, 0.0  ;;  %v136_v42 = vmax.f32 %v74_v33, 0.0  ;;  %v128_v44 = vmul.f32 %v740_v15, %v126_v35  ;;  %v135_v46 = vmax.f32 %v73_v36, 0.0  ;;  %v264_v62 = vld [vmem:[%s954_s9 + $0x78] sm:$0xff]  ;;  %v263_v63 = vld [vmem:[%s954_s9 + $0x70] sm:$0xff]  ;;  %v262_v0 = vld [vmem:[%s954_s9 + $0x68] sm:$0xff] }
   0xf   :  { %121 = vadd.xlane.f32.xlu1 %v118_v34  ;;  %v146_v51 = vmax.f32 %v78_v43, 0.0  ;;  %v145_v53 = vmax.f32 %v77_v47, 0.0  ;;  %v82_v54 = vand.u32 2147483647, %v799_v48  ;;  %v81_v55 = vand.u32 2147483647, %v804_v49  ;;  %515 = vmatprep.subr.mxu0 %v264_v62 }
  0x10   :  { %111 = vadd.xlane.f32.xlu0 %v108_v38  ;;  %v127_v45 = vmul.f32 %v740_v15, %v125_v41  ;;  %v138_v50 = vmul.f32 %v740_v15, %v136_v42  ;;  %v137_v52 = vmul.f32 %v740_v15, %v135_v46  ;;  %516 = vmatpush3.msra.mxu0 %v264_v62  ;;  %v261_v1 = vld [vmem:[%s954_s9 + $0x60] sm:$0xff]  ;;  %v260_v2 = vld [vmem:[%s954_s9 + $0x58] sm:$0xff]  ;;  %v259_v3 = vld [vmem:[%s954_s9 + $0x50] sm:$0xff] }
  0x11   :  { %v148_v56 = vmul.f32 %v740_v15, %v146_v51  ;;  %v147_v57 = vmul.f32 %v740_v15, %v145_v53  ;;  %v156_v58 = vmax.f32 %v82_v54, 0.0  ;;  %v155_v59 = vmax.f32 %v81_v55, 0.0  ;;  %517 = vmatprep.subr.mxu0 %v263_v63  ;;  %v258_v4 = vld [vmem:[%s954_s9 + $0x48] sm:$0xff]  ;;  %v257_v5 = vld [vmem:[%s954_s9 + $0x40] sm:$0xff]  ;;  %v256_v6 = vld [vmem:[%s954_s9 + $0x38] sm:$0xff] }
  0x12   :  { %518 = vmatpush3.msra.mxu0 %v263_v63  ;;  %v255_v7 = vld [vmem:[%s954_s9 + $0x30] sm:$0xff]  ;;  %v254_v8 = vld [vmem:[%s954_s9 + $0x28] sm:$0xff]  ;;  %v253_v9 = vld [vmem:[%s954_s9 + $0x20] sm:$0xff] }
  0x13   :  { %131 = vadd.xlane.f32.xlu1 %v128_v44  ;;  %v158_v60 = vmul.f32 %v740_v15, %v156_v58  ;;  %v157_v61 = vmul.f32 %v740_v15, %v155_v59  ;;  %519 = vmatprep.subr.mxu0 %v262_v0  ;;  %v252_v10 = vld [vmem:[%s954_s9 + $0x18] sm:$0xff]  ;;  %v251_v11 = vld [vmem:[%s954_s9 + $0x10] sm:$0xff]  ;;  %v250_v12 = vld [vmem:[%s954_s9 + $0x8] sm:$0xff] }
  0x14   :  { %129 = vadd.xlane.f32.xlu0 %v127_v45  ;;  %520 = vmatpush3.msra.mxu0 %v262_v0  ;;  %v249_v13 = vld [vmem:[%s954_s9] sm:$0xff]  ;;  %v368_v15 = vld [vmem:[%s956_s11 + $0x78] sm:$0xff]  ;;  %v367_v17 = vld [vmem:[%s956_s11 + $0x70] sm:$0xff] }
  0x15   :  { %521 = vmatprep.subr.mxu0 %v261_v1  ;;  %550 = vmatprep.subr.mxu1 %v368_v15  ;;  %v366_v18 = vld [vmem:[%s956_s11 + $0x68] sm:$0xff]  ;;  %v365_v19 = vld [vmem:[%s956_s11 + $0x60] sm:$0xff]  ;;  %v364_v20 = vld [vmem:[%s956_s11 + $0x58] sm:$0xff] }
  0x16   :  { %522 = vmatpush3.msra.mxu0 %v261_v1  ;;  %551 = vmatpush3.msra.mxu1 %v368_v15  ;;  %v363_v21 = vld [vmem:[%s956_s11 + $0x50] sm:$0xff]  ;;  %v362_v24 = vld [vmem:[%s956_s11 + $0x48] sm:$0xff]  ;;  %v361_v26 = vld [vmem:[%s956_s11 + $0x40] sm:$0xff] }
  0x17   :  { %141 = vadd.xlane.f32.xlu1 %v138_v50  ;;  %523 = vmatprep.subr.mxu0 %v260_v2  ;;  %v360_v27 = vld [vmem:[%s956_s11 + $0x38] sm:$0xff]  ;;  %v359_v28 = vld [vmem:[%s956_s11 + $0x30] sm:$0xff]  ;;  %v358_v30 = vld [vmem:[%s956_s11 + $0x28] sm:$0xff] }
  0x18   :  { %139 = vadd.xlane.f32.xlu0 %v137_v52  ;;  %524 = vmatpush3.msra.mxu0 %v260_v2  ;;  %v357_v32 = vld [vmem:[%s956_s11 + $0x20] sm:$0xff]  ;;  %v356_v40 = vld [vmem:[%s956_s11 + $0x18] sm:$0xff] }
  0x19   :  { %525 = vmatprep.subr.mxu0 %v259_v3  ;;  %552 = vmatprep.subr.mxu1 %v367_v17  ;;  %v353_v48 = vld [vmem:[%s956_s11] sm:$0xff] }
  0x1a   :  { %526 = vmatpush3.msra.mxu0 %v259_v3  ;;  %553 = vmatpush3.msra.mxu1 %v367_v17  ;;  %v477_v49 = vld [vmem:[%s955_s10] ss:$0 sm:$0xff]  ;;  %s638_s10 = smov [#allocation2]  }
  0x1b   :  { %151 = vadd.xlane.f32.xlu1 %v148_v56  ;;  %527 = vmatprep.subr.mxu0 %v258_v4  ;;  %s464_s24 = sshll.u32 %s638_s10, 4  ;;  %s465_s24 = int_to_ptr.vmem [resolvable:$true] %s464_s24 }
  0x1c   :  { %149 = vadd.xlane.f32.xlu0 %v147_v57  ;;  %528 = vmatpush3.msra.mxu0 %v258_v4  ;;  %s616_s1 = scalar_lea.vmem %s465_s24, 256  ;;  %p621_p1 = scmp.lt.s32.totalorder %s465_s24, %s465_s24 }
  0x1d   :  { %529 = vmatprep.subr.mxu0 %v257_v5  ;;  %554 = vmatprep.subr.mxu1 %v366_v18  ;;  %p617_p0 = scmp.ne.s32.totalorder %s465_s24, %s616_s1  ;;  %p622_p2 = scmp.lt.s32.totalorder %s616_s1, %s616_s1 }
  0x1e   :  { %530 = vmatpush3.msra.mxu0 %v257_v5  ;;  %555 = vmatpush3.msra.mxu1 %v366_v18 }
  0x1f   :  { %161 = vadd.xlane.f32.xlu1 %v158_v60  ;;  %531 = vmatprep.subr.mxu0 %v256_v6  ;;  %p623_p3 = por %p622_p2, %p621_p1 }
  0x20   :  { %159 = vadd.xlane.f32.xlu0 %v157_v61  ;;  %532 = vmatpush3.msra.mxu0 %v256_v6 }
  0x21   :  { %533 = vmatprep.subr.mxu0 %v255_v7  ;;  %556 = vmatprep.subr.mxu1 %v365_v19  ;;  %p624_p4 = pnand %p623_p3, %p617_p0 }
  0x22   :  { %534 = vmatpush3.msra.mxu0 %v255_v7  ;;  %557 = vmatpush3.msra.mxu1 %v365_v19 }
  0x23   :  { %535 = vmatprep.subr.mxu0 %v254_v8  ;;  %558 = vmatprep.subr.mxu1 %v364_v20 }
  0x24   :  { %536 = vmatpush3.msra.mxu0 %v254_v8  ;;  %559 = vmatpush3.msra.mxu1 %v364_v20 }
  0x25   :  { %537 = vmatprep.subr.mxu0 %v253_v9  ;;  %560 = vmatprep.subr.mxu1 %v363_v21 }
  0x26   :  { %538 = vmatpush3.msra.mxu0 %v253_v9  ;;  %561 = vmatpush3.msra.mxu1 %v363_v21 }
  0x27   :  { %539 = vmatprep.subr.mxu0 %v252_v10  ;;  %562 = vmatprep.subr.mxu1 %v362_v24 }
  0x28   :  { %540 = vmatpush3.msra.mxu0 %v252_v10  ;;  %563 = vmatpush3.msra.mxu1 %v362_v24 }
  0x29   :  { %541 = vmatprep.subr.mxu0 %v251_v11  ;;  %564 = vmatprep.subr.mxu1 %v361_v26 }
  0x2a   :  { %542 = vmatpush3.msra.mxu0 %v251_v11  ;;  %565 = vmatpush3.msra.mxu1 %v361_v26 }
  0x2b   :  { %543 = vmatprep.subr.mxu0 %v250_v12  ;;  %566 = vmatprep.subr.mxu1 %v360_v27 }
  0x2c   :  { %544 = vmatpush3.msra.mxu0 %v250_v12  ;;  %567 = vmatpush3.msra.mxu1 %v360_v27 }
  0x2d   :  { %545 = vmatprep.subr.mxu0 %v249_v13  ;;  %568 = vmatprep.subr.mxu1 %v359_v28 }
  0x2e   :  { %546 = vmatpush3.msra.mxu0 %v249_v13  ;;  %569 = vmatpush3.msra.mxu1 %v359_v28 }
  0x2f   :  { %570 = vmatprep.subr.mxu1 %v358_v30 }
  0x30   :  { %571 = vmatpush3.msra.mxu1 %v358_v30 }
  0x31   :  { %572 = vmatprep.subr.mxu1 %v357_v32 }
  0x32   :  { %573 = vmatpush3.msra.mxu1 %v357_v32 }
  0x33   :  { %574 = vmatprep.subr.mxu1 %v356_v40 }
  0x34   :  { %575 = vmatpush3.msra.mxu1 %v356_v40 }
  0x8f   :  { %v98_v34 = vpop.xlane.xlu1 %97 }
  0x90   :  { %v96_v35 = vpop.xlane.xlu0 %95 }
  0x94   :  { %v120_v38 = vpop.xlane.xlu1 %119 }
  0x95   :  { %v110_v41 = vpop.xlane.xlu0 %109  ;;  %v123_v50 = vadd.f32 %v120_v38, %v96_v35 }
  0x96   :  { %v113_v51 = vadd.f32 %v110_v41, %v96_v35 }
  0x98   :  { %v122_v42 = vpop.xlane.xlu1 %121  ;;  %v165_v60 = vmax.f32 %v113_v51, %v123_v50 }
  0x99   :  { %v112_v44 = vpop.xlane.xlu0 %111  ;;  %v124_v52 = vadd.f32 %v122_v42, %v98_v34 }
  0x9a   :  { %v114_v53 = vadd.f32 %v112_v44, %v98_v34 }
  0x9c   :  { %v132_v45 = vpop.xlane.xlu1 %131  ;;  %v166_v61 = vmax.f32 %v114_v53, %v124_v52 }
  0x9d   :  { %v130_v46 = vpop.xlane.xlu0 %129  ;;  %v134_v58 = vadd.f32 %v132_v45, %v98_v34 }
  0x9e   :  { %v133_v59 = vadd.f32 %v130_v46, %v96_v35 }
  0x9f   :  { %v168_v2 = vmax.f32 %v166_v61, %v134_v58 }
  0xa0   :  { %v142_v56 = vpop.xlane.xlu1 %141  ;;  %v167_v3 = vmax.f32 %v165_v60, %v133_v59 }
  0xa1   :  { %v140_v57 = vpop.xlane.xlu0 %139  ;;  %v144_v62 = vadd.f32 %v142_v56, %v98_v34 }
  0xa2   :  { %v143_v63 = vadd.f32 %v140_v57, %v96_v35 }
  0xa3   :  { %v170_v6 = vmax.f32 %v168_v2, %v144_v62 }
  0xa4   :  { %v152_v0 = vpop.xlane.xlu1 %151  ;;  %v169_v7 = vmax.f32 %v167_v3, %v143_v63 }
  0xa5   :  { %v150_v1 = vpop.xlane.xlu0 %149  ;;  %v154_v4 = vadd.f32 %v152_v0, %v98_v34 }
  0xa6   :  { %v153_v5 = vadd.f32 %v150_v1, %v96_v35 }
  0xa7   :  { %v172_v10 = vmax.f32 %v170_v6, %v154_v4 }
  0xa8   :  { %v162_v8 = vpop.xlane.xlu1 %161  ;;  %v171_v11 = vmax.f32 %v169_v7, %v153_v5 }
  0xa9   :  { %v160_v9 = vpop.xlane.xlu0 %159  ;;  %v164_v12 = vadd.f32 %v162_v8, %v98_v34 }
  0xaa   :  { %v163_v13 = vadd.f32 %v160_v9, %v96_v35 }
  0xab   :  { %v174_v15 = vmax.f32 %v172_v10, %v164_v12 }
  0xac   :  { %v173_v17 = vmax.f32 %v171_v11, %v163_v13 }
  0xad   :  { %v176_v18 = vsub.f32 %v114_v53, %v174_v15  ;;  %v182_v19 = vsub.f32 %v124_v52, %v174_v15  ;;  %v188_v20 = vsub.f32 %v134_v58, %v174_v15  ;;  %v194_v21 = vsub.f32 %v144_v62, %v174_v15 }
  0xae   :  { %v200_v24 = vsub.f32 %v154_v4, %v174_v15  ;;  %v175_v28 = vsub.f32 %v113_v51, %v173_v17  ;;  %v181_v32 = vsub.f32 %v123_v50, %v173_v17  ;;  %v206_v41 = vsub.f32 %v164_v12, %v174_v15 }
  0xaf   :  { %v179_v26 = vmul.f32 1.442695, %v176_v18  ;;  %v185_v27 = vmul.f32 1.442695, %v182_v19  ;;  %v191_v30 = vmul.f32 1.442695, %v188_v20  ;;  %v187_v44 = vsub.f32 %v133_v59, %v173_v17 }
  0xb0   :  { %v197_v38 = vmul.f32 1.442695, %v194_v21  ;;  %v203_v42 = vmul.f32 1.442695, %v200_v24  ;;  %v177_v34 = vmul.f32 1.442695, %v175_v28  ;;  %v193_v45 = vsub.f32 %v143_v63, %v173_v17 }
  0xb1   :  { %588 = vpow2.f32 %v179_v26  ;;  %v183_v35 = vmul.f32 1.442695, %v181_v32  ;;  %v209_v46 = vmul.f32 1.442695, %v206_v41  ;;  %v189_v52 = vmul.f32 1.442695, %v187_v44 }
  0xb2   :  { %590 = vpow2.f32 %v185_v27  ;;  %v199_v53 = vsub.f32 %v153_v5, %v173_v17  ;;  %v195_v51 = vmul.f32 1.442695, %v193_v45  ;;  %v205_v56 = vsub.f32 %v163_v13, %v173_v17 }
  0xb3   :  { %592 = vpow2.f32 %v191_v30 }
  0xb4   :  { %594 = vpow2.f32 %v197_v38  ;;  %v201_v50 = vmul.f32 1.442695, %v199_v53  ;;  %v207_v57 = vmul.f32 1.442695, %v205_v56 }
  0xb5   :  { %596 = vpow2.f32 %v203_v42 }
  0xb6   :  { %598 = vpow2.f32 %v177_v34 }
  0xb7   :  { %600 = vpow2.f32 %v183_v35 }
  0xb8   :  { %602 = vpow2.f32 %v209_v46 }
  0xb9   :  { %604 = vpow2.f32 %v189_v52 }
  0xba   :  { %606 = vpow2.f32 %v195_v51 }
  0xbb   :  { %608 = vpow2.f32 %v201_v50 }
  0xbc   :  { %610 = vpow2.f32 %v207_v57  ;;  %v478_v57 = vld [vmem:[%s957_s12] ss:$0 sm:$0xff] }
  0xbe   :  { %v589_v58 = vpop.eup %588 }
  0xbf   :  { %v591_v59 = vpop.eup %590  ;;  %v226_v11 = vmul.f32 %v589_v58, %v764_v29 }
  0xc0   :  { %v212_v60 = vadd.f32 %v591_v59, %v589_v58  ;;  %v593_v61 = vpop.eup %592  ;;  %v228_v12 = vmul.f32 %v591_v59, %v754_v23 }
  0xc1   :  { %v595_v62 = vpop.eup %594  ;;  %v232_v27 = vmul.f32 %v593_v61, %v767_v31 }
  0xc2   :  { %v214_v63 = vadd.f32 %v593_v61, %v212_v60  ;;  %v597_v0 = vpop.eup %596  ;;  %v230_v21 = vadd.f32 %v228_v12, %v226_v11  ;;  %v236_v23 = vmul.f32 %v595_v62, %v74_v33 }
  0xc3   :  { %v599_v1 = vpop.eup %598  ;;  %v240_v38 = vmul.f32 %v597_v0, %v78_v43  ;;  %v355_v43 = vld [vmem:[%s956_s11 + $0x10] sm:$0xff] }
  0xc4   :  { %v216_v2 = vadd.f32 %v595_v62, %v214_v63  ;;  %v601_v3 = vpop.eup %600  ;;  %v225_v15 = vmul.f32 %v599_v1, %v742_v16  ;;  %v234_v29 = vadd.f32 %v232_v27, %v230_v21  ;;  %576 = vmatprep.subr.mxu1 %v355_v43 }
  0xc5   :  { %v603_v4 = vpop.eup %602  ;;  %v211_v5 = vadd.f32 %v601_v3, %v599_v1  ;;  %v227_v17 = vmul.f32 %v601_v3, %v735_v14  ;;  %577 = vmatpush3.msra.mxu1 %v355_v43 }
  0xc6   :  { %v218_v6 = vadd.f32 %v597_v0, %v216_v2  ;;  %v605_v7 = vpop.eup %604  ;;  %v238_v16 = vadd.f32 %v236_v23, %v234_v29  ;;  %v244_v34 = vmul.f32 %v603_v4, %v82_v54 }
  0xc7   :  { %v213_v8 = vadd.f32 %v605_v7, %v211_v5  ;;  %v607_v10 = vpop.eup %606  ;;  %v229_v26 = vadd.f32 %v227_v17, %v225_v15  ;;  %v231_v28 = vmul.f32 %v605_v7, %v780_v39 }
  0xc8   :  { %v220_v9 = vadd.f32 %v603_v4, %v218_v6  ;;  %v609_v18 = vpop.eup %608  ;;  %v235_v14 = vmul.f32 %v607_v10, %v73_v36  ;;  %v242_v42 = vadd.f32 %v240_v38, %v238_v16 }
  0xc9   :  { %v215_v13 = vadd.f32 %v607_v10, %v213_v8  ;;  %v611_v20 = vpop.eup %610  ;;  %v233_v30 = vadd.f32 %v231_v28, %v229_v26  ;;  %v239_v31 = vmul.f32 %v609_v18, %v77_v47  ;;  %v354_v47 = vld [vmem:[%s956_s11 + $0x8] sm:$0xff] }
  0xca   :  { %612 = vrcp.f32 %v220_v9  ;;  %v243_v22 = vmul.f32 %v611_v20, %v81_v55  ;;  %v246_v33 = vadd.f32 %v244_v34, %v242_v42  ;;  %578 = vmatprep.subr.mxu1 %v354_v47 }
  0xcb   :  { %v217_v19 = vadd.f32 %v609_v18, %v215_v13  ;;  %v237_v32 = vadd.f32 %v235_v14, %v233_v30  ;;  %579 = vmatpush3.msra.mxu1 %v354_v47 }
  0xcc   :  { %580 = vmatprep.subr.mxu1 %v353_v48 }
  0xcd   :  { %v219_v24 = vadd.f32 %v611_v20, %v217_v19  ;;  %v241_v44 = vadd.f32 %v239_v31, %v237_v32  ;;  %581 = vmatpush3.msra.mxu1 %v353_v48 }
  0xcf   :  { %614 = vrcp.f32 %v219_v24  ;;  %v245_v35 = vadd.f32 %v243_v22, %v241_v44 }
  0xd7   :  { %v613_v41 = vpop.eup %612 }
  0xd8   :  { %v224_v39 = vmul.f32 0.16666667, %v613_v41 }
  0xda   :  { %v248_v45 = vmul.f32 %v246_v33, %v224_v39 }
  0xdc   :  { %v615_v25 = vpop.eup %614 }
  0xdd   :  { %v222_v36 = vmul.f32 0.16666667, %v615_v25 }
  0xdf   :  { %v247_v37 = vmul.f32 %v245_v35, %v222_v36 }
  0xe1   :  { %547 = vmatprep.mubr.f32.mxu0 %v247_v37 }
  0xe2   :  { %548 = vmatmul.mubr.f32.vlgmr.msra.gmra.mxu0 %v248_v45 }
 0x1a2   :  { %v549_v54 = vpop.f32.mrf.mxu0 }
 0x1a3   :  { %v344_v55 = vadd.f32 %v549_v54, %v477_v49 }
 0x1a4   :  { %v338_v46 = vpop.f32.mrf.mxu0 }
 0x1a5   :  { %v339_v52 = vadd.f32 %v477_v49, %v338_v46  ;;  %v350_v53 = vmul.f32 0.01, %v344_v55  ;;  %vm348_vm7 = vcmp.gt.f32.partialorder %v344_v55, 0.0 }
 0x1a7   :  { %vm347_vm6 = vcmp.gt.f32.partialorder %v339_v52, 0.0  ;;  %v349_v51 = vmul.f32 0.01, %v339_v52  ;;  %v352_v50 = vsel %vm348_vm7, %v344_v55, %v350_v53 }
 0x1a9   :  { %v351_v56 = vsel %vm347_vm6, %v339_v52, %v349_v51 }
 0x1aa   :  { %582 = vmatprep.mubr.f32.mxu1 %v351_v56 }
 0x1ab   :  { %583 = vmatmul.mubr.f32.vlgmr.msra.gmra.mxu1 %v352_v50 }
 0x26b   :  { %v584_v58 = vpop.f32.mrf.mxu1 }
 0x26c   :  { %v448_v59 = vadd.f32 %v584_v58, %v478_v57 }
 0x26d   :  { %v442_v60 = vpop.f32.mrf.mxu1 }
 0x26e   :  { %vm452_vm8 = vcmp.gt.f32.partialorder %v448_v59, 0.0  ;;  %v454_v61 = vmul.f32 0.01, %v448_v59  ;;  %v443_v62 = vadd.f32 %v478_v57, %v442_v60 }
 0x270   :  { %v456_v63 = vsel %vm452_vm8, %v448_v59, %v454_v61  ;;  %vm451_vm9 = vcmp.gt.f32.partialorder %v443_v62, 0.0  ;;  %v453_v0 = vmul.f32 0.01, %v443_v62 }
 0x271   :  { %458 = vst [vmem:[#allocation2 + $0x8] sm:$0xff] %v456_v63 }
 0x272   :  { %v455_v1 = vsel %vm451_vm9, %v443_v62, %v453_v0 }
 0x273   :  { %457 = vst [vmem:[#allocation2] sm:$0xff] %v455_v1 }
 0x274   :  { %627 = shalt.err (!%p624_p4)
}
 0x275   :  { %s639_s12 = smov 128   ;;  %s640_s25 = smov 8  }
 0x276   :  { %470 = dma.vmem_to_hbm [thread:$0]  %s465_s24, 256, %s958_s13, [#allocation3], %s639_s12, %s639_s12, %s640_s25  }
 0x277   :  { %636 = dma.done.wait [#allocation3], 256  }
 0x278   :  { %637 = vsyncadd [#allocation3], 4294967040 }
 0x279   :  { %474 = vsyncpa [#allocation3], 1 }

</bundles_post_ra>
